<compile_context>
chip_gen: v5e
topology: v5e:2x2
jax: 0.10.0
libtpu: 0.0.40
codegen_flags: <defaults>
</compile_context>

<pallas_src>
import functools

import jax
import jax.numpy as jnp
import numpy as np
from jax import lax
from jax.experimental import pallas as pl
from jax.experimental.pallas import tpu as pltpu

EPS = 1e-5          # nn.LayerNorm default eps
NEG = -1e30         # additive mask value


def _rot_half(t):
    h = t.shape[-1] // 2
    return jnp.concatenate([-t[..., h:], t[..., :h]], axis=-1)


# ----------------------------------------------------------------------------
# Kernel A: LayerNorm + QKV projection + rotary + autopad zeroing
# ----------------------------------------------------------------------------
def _ln_qkv_rope_kernel(seq_len, heads, dh, tile_n,
                        x_ref, g_ref, b_ref, w_ref,
                        cq_ref, sq_ref, ck_ref, sk_ref, o_ref):
    t = pl.program_id(1)
    inner = heads * dh

    x = x_ref[0]                                              # (tile_n, D) f32
    mu = jnp.mean(x, axis=-1, keepdims=True)
    var = jnp.mean((x - mu) ** 2, axis=-1, keepdims=True)
    xn = (x - mu) * lax.rsqrt(var + EPS)
    xn = xn * g_ref[...] + b_ref[...]

    # autopad: rows beyond the true sequence length must behave as zero q/k/v
    pos = t * tile_n + lax.broadcasted_iota(jnp.int32, (tile_n, 1), 0)
    xn = jnp.where(pos < seq_len, xn, 0.0)

    qkv = jnp.dot(xn.astype(jnp.bfloat16), w_ref[...],
                  preferred_element_type=jnp.float32)         # (tile_n, 3*inner) f32

    cq, sq = cq_ref[...], sq_ref[...]
    ck, sk = ck_ref[...], sk_ref[...]
    pieces = []
    for h in range(heads):                                    # rotary (+ scale) on q
        qh = qkv[:, h * dh:(h + 1) * dh]
        pieces.append(qh * cq + _rot_half(qh) * sq)
    for h in range(heads):                                    # rotary on k
        kh = qkv[:, inner + h * dh:inner + (h + 1) * dh]
        pieces.append(kh * ck + _rot_half(kh) * sk)
    pieces.append(qkv[:, 2 * inner:])                         # v unchanged
    o_ref[0] = jnp.concatenate(pieces, axis=-1).astype(jnp.bfloat16)


# ----------------------------------------------------------------------------
# Kernel B: local windowed attention (all heads per window) + fused out-proj
# ----------------------------------------------------------------------------
def _local_attn_kernel(heads, dh,
                       q_ref, kp_ref, kc_ref, kn_ref, vp_ref, vc_ref, vn_ref,
                       ibias_ref, bbias_ref, wo_ref, o_ref):
    q = q_ref[0]                                                       # (win, inner) bf16
    k = jnp.concatenate([kp_ref[0], kc_ref[0], kn_ref[0]], axis=0)     # (3*win, inner)
    v = jnp.concatenate([vp_ref[0], vc_ref[0], vn_ref[0]], axis=0)
    bias = ibias_ref[...] + bbias_ref[0]                               # (win, 3*win) f32

    outs = []
    for h in range(heads):
        sl = slice(h * dh, (h + 1) * dh)
        sim = lax.dot_general(q[:, sl], k[:, sl], (((1,), (1,)), ((), ())),
                              preferred_element_type=jnp.float32) + bias
        m = jnp.max(sim, axis=-1, keepdims=True)
        p = jnp.exp(sim - m)
        denom = jnp.sum(p, axis=-1, keepdims=True)
        attn = (p * pl.reciprocal(denom, approx=True)).astype(jnp.bfloat16)
        outs.append(jnp.dot(attn, v[:, sl], preferred_element_type=jnp.float32))

    slab = jnp.concatenate(outs, axis=-1).astype(jnp.bfloat16)         # (win, inner)
    o_ref[0] = jnp.dot(slab, wo_ref[...], preferred_element_type=jnp.float32)


# ----------------------------------------------------------------------------
# Wrapper
# ----------------------------------------------------------------------------
def _pick_seq_tile(n_pad, win, cap=512):
    """Largest multiple of the window that divides n_pad, is a multiple of 8
    sublanes and is <= cap rows (keeps Kernel A blocks small enough to pipeline)."""
    best = None
    cand = win
    while cand <= min(cap, n_pad):
        if n_pad % cand == 0 and cand % 8 == 0:
            best = cand
        cand += win
    return best if best is not None else n_pad


def local_mha_forward(x, params, heads, window_size):
    B, N, D = x.shape
    inner = params["w_qkv"].shape[1] // 3
    dh = inner // heads
    win = window_size
    pad = (-N) % win
    n_pad = N + pad
    nw = n_pad // win

    x_pad = jnp.pad(x, ((0, 0), (0, pad), (0, 0))) if pad else x
    w_qkv = params["w_qkv"].astype(jnp.bfloat16)
    w_out = params["w_out"].astype(jnp.bfloat16)

    # rotary tables; q positions offset by +win (lucidrains' relative-per-window
    # convention) and the 1/sqrt(dh) scale folded into the q tables
    inv_freq = 1.0 / (10000.0 ** (jnp.arange(0, dh, 2, dtype=jnp.float32) / dh))

    def tables(pos, scale):
        f = pos[:, None].astype(jnp.float32) * inv_freq[None, :]
        f = jnp.concatenate([f, f], axis=-1)                           # (n_pad, dh)
        return jnp.cos(f) * scale, jnp.sin(f) * scale

    cos_k, sin_k = tables(jnp.arange(n_pad), 1.0)
    cos_q, sin_q = tables(jnp.arange(n_pad) + win, dh ** -0.5)

    # precomputed additive masks: exact-window interior + look-around boundary
    i = jnp.arange(win)[:, None]
    j = jnp.arange(3 * win)[None, :]
    ibias = jnp.where((j < i) | (j > i + 2 * win), NEG, 0.0).astype(jnp.float32)
    kpos = (jnp.arange(nw)[:, None] - 1) * win + jnp.arange(3 * win)[None, :]
    bbias = jnp.where((kpos < 0) | (kpos >= n_pad), NEG, 0.0)
    bbias = bbias.astype(jnp.float32)[:, None, :]                      # (nw, 1, 3*win)

    tile_n = _pick_seq_tile(n_pad, win)
    cparams = pltpu.CompilerParams(
        dimension_semantics=("parallel", "parallel"),
        vmem_limit_bytes=48 * 1024 * 1024)

    # ---- Kernel A: LN + QKV + rotary --------------------------------------
    qkv = pl.pallas_call(
        functools.partial(_ln_qkv_rope_kernel, N, heads, dh, tile_n),
        out_shape=jax.ShapeDtypeStruct((B, n_pad, 3 * inner), jnp.bfloat16),
        grid=(B, n_pad // tile_n),
        in_specs=[
            pl.BlockSpec((1, tile_n, D), lambda b, t: (b, t, 0)),
            pl.BlockSpec((1, D), lambda b, t: (0, 0)),
            pl.BlockSpec((1, D), lambda b, t: (0, 0)),
            pl.BlockSpec((D, 3 * inner), lambda b, t: (0, 0)),
            pl.BlockSpec((tile_n, dh), lambda b, t: (t, 0)),
            pl.BlockSpec((tile_n, dh), lambda b, t: (t, 0)),
            pl.BlockSpec((tile_n, dh), lambda b, t: (t, 0)),
            pl.BlockSpec((tile_n, dh), lambda b, t: (t, 0)),
        ],
        out_specs=pl.BlockSpec((1, tile_n, 3 * inner), lambda b, t: (b, t, 0)),
        compiler_params=cparams,
    )(x_pad, params["ln_g"], params["ln_b"], w_qkv, cos_q, sin_q, cos_k, sin_k)

    # ---- Kernel B: local attention + fused output projection ---------------
    # look-around K/V windows fetched straight from the qkv slab (last-dim block
    # index 0/1/2 selects q/k/v); clamped window indices are masked via bbias.
    q_spec = pl.BlockSpec((1, win, inner), lambda b, w: (b, w, 0))
    k_prev = pl.BlockSpec((1, win, inner), lambda b, w: (b, jnp.maximum(w - 1, 0), 1))
    k_cur = pl.BlockSpec((1, win, inner), lambda b, w: (b, w, 1))
    k_next = pl.BlockSpec((1, win, inner), lambda b, w: (b, jnp.minimum(w + 1, nw - 1), 1))
    v_prev = pl.BlockSpec((1, win, inner), lambda b, w: (b, jnp.maximum(w - 1, 0), 2))
    v_cur = pl.BlockSpec((1, win, inner), lambda b, w: (b, w, 2))
    v_next = pl.BlockSpec((1, win, inner), lambda b, w: (b, jnp.minimum(w + 1, nw - 1), 2))

    out = pl.pallas_call(
        functools.partial(_local_attn_kernel, heads, dh),
        out_shape=jax.ShapeDtypeStruct((B, n_pad, D), jnp.float32),
        grid=(B, nw),
        in_specs=[
            q_spec, k_prev, k_cur, k_next, v_prev, v_cur, v_next,
            pl.BlockSpec((win, 3 * win), lambda b, w: (0, 0)),
            pl.BlockSpec((1, 1, 3 * win), lambda b, w: (w, 0, 0)),
            pl.BlockSpec((inner, D), lambda b, w: (0, 0)),
        ],
        out_specs=pl.BlockSpec((1, win, D), lambda b, w: (b, w, 0)),
        compiler_params=cparams,
    )(qkv, qkv, qkv, qkv, qkv, qkv, qkv, ibias, bbias, w_out)

    return out[:, :N, :]


# ----------------------------------------------------------------------------
# Pure-JAX reference (same math & same bf16 cast points) for correctness check
# ----------------------------------------------------------------------------
def local_mha_reference(x, params, heads, window_size):
    B, N, D = x.shape
    win = window_size
    mu = x.mean(-1, keepdims=True)
    var = ((x - mu) ** 2).mean(-1, keepdims=True)
    xn = (x - mu) * lax.rsqrt(var + EPS) * params["ln_g"][0] + params["ln_b"][0]
    qkv = jnp.dot(xn.astype(jnp.bfloat16), params["w_qkv"].astype(jnp.bfloat16),
                  preferred_element_type=jnp.float32)
    inner = qkv.shape[-1] // 3
    dh = inner // heads
    q, k, v = jnp.split(qkv, 3, -1)

    def heads_split(t):
        return t.reshape(B, N, heads, dh).transpose(0, 2, 1, 3).reshape(B * heads, N, dh)

    q, k, v = map(heads_split, (q, k, v))
    pad = (-N) % win
    n_pad = N + pad
    if pad:
        q, k, v = (jnp.pad(t, ((0, 0), (0, pad), (0, 0))) for t in (q, k, v))
    nw = n_pad // win

    inv_freq = 1.0 / (10000.0 ** (jnp.arange(0, dh, 2, dtype=jnp.float32) / dh))

    def rope(t, pos, scale):
        f = pos[:, None].astype(jnp.float32) * inv_freq[None, :]
        f = jnp.concatenate([f, f], -1)
        return (t * jnp.cos(f) + _rot_half(t) * jnp.sin(f)) * scale

    q = rope(q, jnp.arange(n_pad) + win, dh ** -0.5)
    k = rope(k, jnp.arange(n_pad), 1.0)
    q, k, v = (t.astype(jnp.bfloat16) for t in (q, k, v))

    kp = jnp.pad(k, ((0, 0), (win, win), (0, 0)))
    vp = jnp.pad(v, ((0, 0), (win, win), (0, 0)))
    idx = jnp.arange(nw)[:, None] * win + jnp.arange(3 * win)[None, :]
    kb, vb = kp[:, idx, :], vp[:, idx, :]                     # (G, nw, 3*win, dh)
    qb = q.reshape(-1, nw, win, dh)

    sim = jnp.einsum('gwid,gwjd->gwij', qb, kb, preferred_element_type=jnp.float32)
    i = jnp.arange(win)[:, None]
    j = jnp.arange(3 * win)[None, :]
    interior = (j < i) | (j > i + 2 * win)
    kpos = (jnp.arange(nw)[:, None] - 1) * win + jnp.arange(3 * win)[None, :]
    boundary = (kpos < 0) | (kpos >= n_pad)
    mask = interior[None, :, :] | boundary[:, None, :]
    sim = jnp.where(mask[None], NEG, sim)
    attn = jax.nn.softmax(sim, -1).astype(jnp.bfloat16)
    ob = jnp.einsum('gwij,gwjd->gwid', attn, vb,
                    preferred_element_type=jnp.float32).reshape(-1, n_pad, dh)[:, :N]
    out = ob.reshape(B, heads, N, dh).transpose(0, 2, 1, 3).reshape(B, N, inner)
    return jnp.dot(out.astype(jnp.bfloat16), params["w_out"].astype(jnp.bfloat16),
                   preferred_element_type=jnp.float32)


if __name__ == "__main__":
    B, N, D = 2, 60, 64                       # N not a multiple of window -> autopad path
    heads, dim_head, window_size = 2, 64, 16
    inner = heads * dim_head

    key = jax.random.PRNGKey(0)
    k_x, k_qkv, k_out, k_g, k_b = jax.random.split(key, 5)
    x = jax.random.normal(k_x, (B, N, D), jnp.float32)
    params = dict(
        ln_g=1.0 + 0.1 * jax.random.normal(k_g, (1, D), jnp.float32),
        ln_b=0.1 * jax.random.normal(k_b, (1, D), jnp.float32),
        w_qkv=jax.random.normal(k_qkv, (D, 3 * inner), jnp.float32) / jnp.sqrt(D),
        w_out=jax.random.normal(k_out, (inner, D), jnp.float32) / jnp.sqrt(inner),
    )

    out = local_mha_forward(x, params, heads, window_size)
    out = jax.block_until_ready(out)
    assert out.shape == (B, N, D)

    ref = local_mha_reference(x, params, heads, window_size)
    np.testing.assert_allclose(np.asarray(out), np.asarray(ref), rtol=2e-2, atol=2e-2)

    print("KERNEL_OK")
</pallas_src>

<mosaic_0001>
module attributes {stable_mosaic.version = 11 : i64} {
  func.func @_ln_qkv_rope_kernel(%arg0: i32, %arg1: i32, %arg2: memref<1x64x64xf32, #tpu.memory_space<vmem>>, %arg3: memref<1x64xf32, #tpu.memory_space<vmem>>, %arg4: memref<1x64xf32, #tpu.memory_space<vmem>>, %arg5: memref<64x384xbf16, #tpu.memory_space<vmem>>, %arg6: memref<64x64xf32, #tpu.memory_space<vmem>>, %arg7: memref<64x64xf32, #tpu.memory_space<vmem>>, %arg8: memref<64x64xf32, #tpu.memory_space<vmem>>, %arg9: memref<64x64xf32, #tpu.memory_space<vmem>>, %arg10: memref<1x64x384xbf16, #tpu.memory_space<vmem>>) attributes {dimension_semantics = [#tpu.dimension_semantics<parallel>, #tpu.dimension_semantics<parallel>], iteration_bounds = array<i64: 2, 1>, scalar_prefetch = 0 : i64, scratch_operands = 0 : i64, tpu.core_type = #tpu.core_type<tc>, window_params = [{transform_indices = @transform_0, window_bounds = array<i64: 1, 64, 64>}, {pipeline_mode = #tpu.pipeline_mode<synchronous>, transform_indices = @transform_1, window_bounds = array<i64: 1, 64>}, {pipeline_mode = #tpu.pipeline_mode<synchronous>, transform_indices = @transform_2, window_bounds = array<i64: 1, 64>}, {pipeline_mode = #tpu.pipeline_mode<synchronous>, transform_indices = @transform_3, window_bounds = array<i64: 64, 384>}, {transform_indices = @transform_4, window_bounds = array<i64: 64, 64>}, {transform_indices = @transform_5, window_bounds = array<i64: 64, 64>}, {transform_indices = @transform_6, window_bounds = array<i64: 64, 64>}, {transform_indices = @transform_7, window_bounds = array<i64: 64, 64>}, {transform_indices = @transform_8, window_bounds = array<i64: 1, 64, 384>}]} {
    %c0 = arith.constant 0 : index
    %c0_0 = arith.constant 0 : index
    %c0_1 = arith.constant 0 : index
    %0 = vector.load %arg2[%c0, %c0_0, %c0_1] : memref<1x64x64xf32, #tpu.memory_space<vmem>>, vector<1x64x64xf32>
    %1 = vector.shape_cast %0 : vector<1x64x64xf32> to vector<64x64xf32>
    %cst = arith.constant dense<0.000000e+00> : vector<64xf32>
    %2 = vector.multi_reduction <add>, %1, %cst [1] : vector<64x64xf32> to vector<64xf32>
    %3 = vector.shape_cast %2 : vector<64xf32> to vector<64x1xf32>
    %cst_2 = arith.constant 6.400000e+01 : f32
    %4 = vector.broadcast %cst_2 : f32 to vector<64x1xf32>
    %5 = arith.divf %3, %4 : vector<64x1xf32>
    %6 = vector.broadcast %5 : vector<64x1xf32> to vector<64x64xf32>
    %7 = arith.subf %1, %6 : vector<64x64xf32>
    %8 = arith.mulf %7, %7 : vector<64x64xf32>
    %cst_3 = arith.constant dense<0.000000e+00> : vector<64xf32>
    %9 = vector.multi_reduction <add>, %8, %cst_3 [1] : vector<64x64xf32> to vector<64xf32>
    %10 = vector.shape_cast %9 : vector<64xf32> to vector<64x1xf32>
    %cst_4 = arith.constant 6.400000e+01 : f32
    %11 = vector.broadcast %cst_4 : f32 to vector<64x1xf32>
    %12 = arith.divf %10, %11 : vector<64x1xf32>
    %13 = vector.broadcast %5 : vector<64x1xf32> to vector<64x64xf32>
    %14 = arith.subf %1, %13 : vector<64x64xf32>
    %cst_5 = arith.constant 9.99999974E-6 : f32
    %15 = vector.broadcast %cst_5 : f32 to vector<64x1xf32>
    %16 = arith.addf %12, %15 : vector<64x1xf32>
    %17 = math.rsqrt %16 : vector<64x1xf32>
    %18 = vector.broadcast %17 : vector<64x1xf32> to vector<64x64xf32>
    %19 = arith.mulf %14, %18 : vector<64x64xf32>
    %c0_6 = arith.constant 0 : index
    %c0_7 = arith.constant 0 : index
    %20 = vector.load %arg3[%c0_6, %c0_7] : memref<1x64xf32, #tpu.memory_space<vmem>>, vector<1x64xf32>
    %21 = vector.broadcast %20 : vector<1x64xf32> to vector<64x64xf32>
    %22 = arith.mulf %19, %21 : vector<64x64xf32>
    %c0_8 = arith.constant 0 : index
    %c0_9 = arith.constant 0 : index
    %23 = vector.load %arg4[%c0_8, %c0_9] : memref<1x64xf32, #tpu.memory_space<vmem>>, vector<1x64xf32>
    %24 = vector.broadcast %23 : vector<1x64xf32> to vector<64x64xf32>
    %25 = arith.addf %22, %24 : vector<64x64xf32>
    %c64_i32 = arith.constant 64 : i32
    %26 = arith.muli %arg1, %c64_i32 : i32
    %27 = tpu.iota {dimensions = array<i32: 0>} : vector<64x1xi32>
    %28 = vector.broadcast %26 : i32 to vector<64x1xi32>
    %29 = arith.addi %28, %27 : vector<64x1xi32>
    %c60_i32 = arith.constant 60 : i32
    %30 = vector.broadcast %c60_i32 : i32 to vector<64x1xi32>
    %31 = arith.cmpi slt, %29, %30 : vector<64x1xi32>
    %cst_10 = arith.constant 0.000000e+00 : f32
    %32 = vector.shape_cast %31 : vector<64x1xi1> to vector<64x1xi1>
    %33 = vector.broadcast %32 : vector<64x1xi1> to vector<64x64xi1>
    %34 = vector.broadcast %cst_10 : f32 to vector<64x64xf32>
    %35 = arith.select %33, %25, %34 : vector<64x64xi1>, vector<64x64xf32>
    %36 = arith.truncf %35 : vector<64x64xf32> to vector<64x64xbf16>
    %c0_11 = arith.constant 0 : index
    %c0_12 = arith.constant 0 : index
    %37 = vector.load %arg5[%c0_11, %c0_12] : memref<64x384xbf16, #tpu.memory_space<vmem>>, vector<64x384xbf16>
    %cst_13 = arith.constant dense<0.000000e+00> : vector<64x384xf32>
    %38 = tpu.matmul %36, %37, %cst_13 {dimension_numbers = #tpu.dot_dimension_numbers<[1], [0], [0], [1], [0, 0, 1, 1], [], []>} : vector<64x64xbf16>, vector<64x384xbf16>, vector<64x384xf32> -> vector<64x384xf32>
    %c0_14 = arith.constant 0 : index
    %c0_15 = arith.constant 0 : index
    %39 = vector.load %arg6[%c0_14, %c0_15] : memref<64x64xf32, #tpu.memory_space<vmem>>, vector<64x64xf32>
    %c0_16 = arith.constant 0 : index
    %c0_17 = arith.constant 0 : index
    %40 = vector.load %arg7[%c0_16, %c0_17] : memref<64x64xf32, #tpu.memory_space<vmem>>, vector<64x64xf32>
    %c0_18 = arith.constant 0 : index
    %c0_19 = arith.constant 0 : index
    %41 = vector.load %arg8[%c0_18, %c0_19] : memref<64x64xf32, #tpu.memory_space<vmem>>, vector<64x64xf32>
    %c0_20 = arith.constant 0 : index
    %c0_21 = arith.constant 0 : index
    %42 = vector.load %arg9[%c0_20, %c0_21] : memref<64x64xf32, #tpu.memory_space<vmem>>, vector<64x64xf32>
    %43 = vector.extract_strided_slice %38 {offsets = [0, 0], sizes = [64, 64], strides = [1, 1]} : vector<64x384xf32> to vector<64x64xf32>
    %44 = arith.mulf %43, %39 : vector<64x64xf32>
    %45 = vector.extract_strided_slice %43 {offsets = [0, 32], sizes = [64, 32], strides = [1, 1]} : vector<64x64xf32> to vector<64x32xf32>
    %cst_22 = arith.constant 0.000000e+00 : f32
    %46 = vector.broadcast %cst_22 : f32 to vector<64x32xf32>
    %47 = arith.subf %46, %45 : vector<64x32xf32>
    %48 = vector.extract_strided_slice %43 {offsets = [0, 0], sizes = [64, 32], strides = [1, 1]} : vector<64x64xf32> to vector<64x32xf32>
    %49 = tpu.concatenate %47, %48 in 1 : vector<64x32xf32>, vector<64x32xf32> -> vector<64x64xf32>
    %50 = arith.mulf %49, %40 : vector<64x64xf32>
    %51 = arith.addf %44, %50 : vector<64x64xf32>
    %52 = vector.extract_strided_slice %38 {offsets = [0, 64], sizes = [64, 64], strides = [1, 1]} : vector<64x384xf32> to vector<64x64xf32>
    %53 = arith.mulf %52, %39 : vector<64x64xf32>
    %54 = vector.extract_strided_slice %52 {offsets = [0, 32], sizes = [64, 32], strides = [1, 1]} : vector<64x64xf32> to vector<64x32xf32>
    %cst_23 = arith.constant 0.000000e+00 : f32
    %55 = vector.broadcast %cst_23 : f32 to vector<64x32xf32>
    %56 = arith.subf %55, %54 : vector<64x32xf32>
    %57 = vector.extract_strided_slice %52 {offsets = [0, 0], sizes = [64, 32], strides = [1, 1]} : vector<64x64xf32> to vector<64x32xf32>
    %58 = tpu.concatenate %56, %57 in 1 : vector<64x32xf32>, vector<64x32xf32> -> vector<64x64xf32>
    %59 = arith.mulf %58, %40 : vector<64x64xf32>
    %60 = arith.addf %53, %59 : vector<64x64xf32>
    %61 = vector.extract_strided_slice %38 {offsets = [0, 128], sizes = [64, 64], strides = [1, 1]} : vector<64x384xf32> to vector<64x64xf32>
    %62 = arith.mulf %61, %41 : vector<64x64xf32>
    %63 = vector.extract_strided_slice %61 {offsets = [0, 32], sizes = [64, 32], strides = [1, 1]} : vector<64x64xf32> to vector<64x32xf32>
    %cst_24 = arith.constant 0.000000e+00 : f32
    %64 = vector.broadcast %cst_24 : f32 to vector<64x32xf32>
    %65 = arith.subf %64, %63 : vector<64x32xf32>
    %66 = vector.extract_strided_slice %61 {offsets = [0, 0], sizes = [64, 32], strides = [1, 1]} : vector<64x64xf32> to vector<64x32xf32>
    %67 = tpu.concatenate %65, %66 in 1 : vector<64x32xf32>, vector<64x32xf32> -> vector<64x64xf32>
    %68 = arith.mulf %67, %42 : vector<64x64xf32>
    %69 = arith.addf %62, %68 : vector<64x64xf32>
    %70 = vector.extract_strided_slice %38 {offsets = [0, 192], sizes = [64, 64], strides = [1, 1]} : vector<64x384xf32> to vector<64x64xf32>
    %71 = arith.mulf %70, %41 : vector<64x64xf32>
    %72 = vector.extract_strided_slice %70 {offsets = [0, 32], sizes = [64, 32], strides = [1, 1]} : vector<64x64xf32> to vector<64x32xf32>
    %cst_25 = arith.constant 0.000000e+00 : f32
    %73 = vector.broadcast %cst_25 : f32 to vector<64x32xf32>
    %74 = arith.subf %73, %72 : vector<64x32xf32>
    %75 = vector.extract_strided_slice %70 {offsets = [0, 0], sizes = [64, 32], strides = [1, 1]} : vector<64x64xf32> to vector<64x32xf32>
    %76 = tpu.concatenate %74, %75 in 1 : vector<64x32xf32>, vector<64x32xf32> -> vector<64x64xf32>
    %77 = arith.mulf %76, %42 : vector<64x64xf32>
    %78 = arith.addf %71, %77 : vector<64x64xf32>
    %79 = vector.extract_strided_slice %38 {offsets = [0, 256], sizes = [64, 128], strides = [1, 1]} : vector<64x384xf32> to vector<64x128xf32>
    %80 = tpu.concatenate %51, %60, %69, %78, %79 in 1 : vector<64x64xf32>, vector<64x64xf32>, vector<64x64xf32>, vector<64x64xf32>, vector<64x128xf32> -> vector<64x384xf32>
    %81 = arith.truncf %80 : vector<64x384xf32> to vector<64x384xbf16>
    %c0_26 = arith.constant 0 : index
    %c0_27 = arith.constant 0 : index
    %c0_28 = arith.constant 0 : index
    %82 = vector.load %arg10[%c0_26, %c0_27, %c0_28] : memref<1x64x384xbf16, #tpu.memory_space<vmem>>, vector<1x64x384xbf16>
    %83 = vector.shape_cast %82 : vector<1x64x384xbf16> to vector<64x384xbf16>
    %84 = vector.shape_cast %81 : vector<64x384xbf16> to vector<1x64x384xbf16>
    tpu.vector_store %arg10[%c0_26, %c0_27, %c0_28], %84 {strides = array<i32>} : memref<1x64x384xbf16, #tpu.memory_space<vmem>>, vector<1x64x384xbf16>,
    return
  }
  func.func @transform_0(%arg0: i32, %arg1: i32) -> (i32, i32, i32) {
    %c0_i32 = arith.constant 0 : i32
    %c0_i32_0 = arith.constant 0 : i32
    return %arg0, %arg1, %c0_i32 : i32, i32, i32
  }
  func.func @transform_1(%arg0: i32, %arg1: i32) -> (i32, i32) {
    %c0_i32 = arith.constant 0 : i32
    %c0_i32_0 = arith.constant 0 : i32
    %c0_i32_1 = arith.constant 0 : i32
    return %c0_i32, %c0_i32_0 : i32, i32
  }
  func.func @transform_2(%arg0: i32, %arg1: i32) -> (i32, i32) {
    %c0_i32 = arith.constant 0 : i32
    %c0_i32_0 = arith.constant 0 : i32
    %c0_i32_1 = arith.constant 0 : i32
    return %c0_i32, %c0_i32_0 : i32, i32
  }
  func.func @transform_3(%arg0: i32, %arg1: i32) -> (i32, i32) {
    %c0_i32 = arith.constant 0 : i32
    %c0_i32_0 = arith.constant 0 : i32
    %c0_i32_1 = arith.constant 0 : i32
    return %c0_i32, %c0_i32_0 : i32, i32
  }
  func.func @transform_4(%arg0: i32, %arg1: i32) -> (i32, i32) {
    %c0_i32 = arith.constant 0 : i32
    %c0_i32_0 = arith.constant 0 : i32
    return %arg1, %c0_i32 : i32, i32
  }
  func.func @transform_5(%arg0: i32, %arg1: i32) -> (i32, i32) {
    %c0_i32 = arith.constant 0 : i32
    %c0_i32_0 = arith.constant 0 : i32
    return %arg1, %c0_i32 : i32, i32
  }
  func.func @transform_6(%arg0: i32, %arg1: i32) -> (i32, i32) {
    %c0_i32 = arith.constant 0 : i32
    %c0_i32_0 = arith.constant 0 : i32
    return %arg1, %c0_i32 : i32, i32
  }
  func.func @transform_7(%arg0: i32, %arg1: i32) -> (i32, i32) {
    %c0_i32 = arith.constant 0 : i32
    %c0_i32_0 = arith.constant 0 : i32
    return %arg1, %c0_i32 : i32, i32
  }
  func.func @transform_8(%arg0: i32, %arg1: i32) -> (i32, i32, i32) {
    %c0_i32 = arith.constant 0 : i32
    %c0_i32_0 = arith.constant 0 : i32
    return %arg0, %arg1, %c0_i32 : i32, i32, i32
  }
}

</mosaic_0001>

<bundles_post_ra>
// kernel: tpu_custom_call.1
= control target key start
LH: loop header
LB: loop body
LE: loop exit
PB: predicated region body
PF: predicated region fallthrough
CT: control target
= control target key end

     0   :  { %s3125_s0 = inlined_call_operand.hbm [shape: f32[2,64,64], index: 0, kind: input, shape index: {}]   ;;  %s3126_s1 = inlined_call_operand.hbm [shape: f32[1,64], index: 1, kind: input, shape index: {}]   ;;  %s3127_s2 = inlined_call_operand.vmem [shape: f32[1,64], index: 2, kind: input, shape index: {}]   ;;  %s3128_s3 = inlined_call_operand.hbm [shape: bf16[64,384], index: 3, kind: input, shape index: {}]   ;;  %s3129_s4 = inlined_call_operand.hbm [shape: f32[64,64], index: 4, kind: input, shape index: {}]   ;;  %s3130_s5 = inlined_call_operand.hbm [shape: f32[64,64], index: 5, kind: input, shape index: {}]   ;;  %s3131_s6 = inlined_call_operand.hbm [shape: f32[64,64], index: 6, kind: input, shape index: {}]   ;;  %s3132_s7 = inlined_call_operand.hbm [shape: f32[64,64], index: 7, kind: input, shape index: {}]   ;;  %s3133_s8 = inlined_call_operand.hbm [shape: bf16[2,64,384], index: 8, kind: output, shape index: {}]  }
   0x1   :  { %3144 = sst [smem:[#allocation25_spill]] %s3126_s1 }
   0x2   :  { %3145 = sst [smem:[#allocation26_spill]] %s3128_s3 }
   0x3   :  { %3146 = sst [smem:[#allocation27_spill]] %s3129_s4 }
   0x4   :  { %3147 = sst [smem:[#allocation28_spill]] %s3130_s5 }
   0x5   :  { %13 = vsyncpa [#allocation3], 0 }
   0x6   :  { %15 = vsyncpa [#allocation3 + $0x1], 0 }
   0x7   :  { %16 = vsyncpa [#allocation6], 0 }
   0x8   :  { %17 = vsyncpa [#allocation9], 0 }
   0x9   :  { %18 = vsyncpa [#allocation12], 0 }
   0xa   :  { %19 = vsyncpa [#allocation4], 0 }
   0xb   :  { %21 = vsyncpa [#allocation4 + $0x1], 0  ;;  %s2314_s27 = smov 0   ;;  %s2316_s28 = smov 0  }
   0xc   :  { %s2318_s29 = smov 0   ;;  %s2320_s30 = smov 0  }
   0xd   :  { %s2322_s9 = smov 0   ;;  %s2324_s10 = smov 0  }
   0xe LB: > { %s3134_s11 = sadd.s32 4294967295, %s2251_s10   ;;  %p1680_p0 = scmp.ge.s32.totalorder %s2251_s10, 1  ;;  %s2251_s10 = sphi %s2324_s10, %s27_s10   ;;  %s2247_s9 = sphi %s2322_s9, %s3177_s9   ;;  %s2243_s30 = sphi %s2320_s30, %s3176_s30   ;;  %s2239_s29 = sphi %s2318_s29, %s3175_s29   ;;  %s2235_s28 = sphi %s2316_s28, %s3174_s28   ;;  %s2231_s27 = sphi %s2314_s27, %s3173_s27  }
   0xf   : > { %p2348_p1 = scmp.eq.s32.totalorder %s3134_s11, 0  ;;  %p267_p2 = scmp.lt.s32.totalorder %s2251_s10, 3 }
  0x10   : > { %s3149_s1 = sld [smem:[#allocation25_spill]]  ;;  %p1687_p4 = scmp.ge.s32.totalorder %s2251_s10, 2 }
  0x11   : > { %p2356_p3 = pnand %p1680_p0, %p267_p2  ;;  %s2253_s17 = smov [#allocation5]  }
  0x12   : > { %s281_s18 = sshll.u32 %s2253_s17, 4  ;;  %s3151_s4 = sld [smem:[#allocation27_spill]]  ;;  %s282_s18 = int_to_ptr.vmem [resolvable:$true] %s281_s18 }
  0x13   : > { %p1817_p5 = pneg %p2356_p3  ;;  %s2254_s23 = smov [#allocation8]  }
  0x14   : > { %s312_s24 = sshll.u32 %s2254_s23, 4  ;;  %s3135_s25 = smov 128   ;;  %s313_s24 = int_to_ptr.vmem [resolvable:$true] %s312_s24 }
  0x15   : > { %p2368_p6 = pnand %p1817_p5, %p2348_p1  ;;  %s3137_s26 = smov 8  }
  0x16   : > { %s279_s15 = sshll.u32 %s3149_s1, 4  ;;  %s344_s17 = sshll.u32 %s3131_s6, 4  ;;  %s280_s15 = int_to_ptr.hbm [resolvable:$true] %s279_s15  ;;  %s345_s17 = int_to_ptr.hbm [resolvable:$true] %s344_s17 }
  0x17   : > { %1820 = dma.hbm_to_vmem [thread:$0]  (!%p2368_p6), %s280_s15, 16, %s282_s18, [#allocation6]  }
  0x18   : > { %s310_s21 = sshll.u32 %s3151_s4, 4  ;;  %s2257_s19 = smov [#allocation11]   ;;  %s311_s21 = int_to_ptr.hbm [resolvable:$true] %s310_s21 }
  0x19   : > { %1826 = dma.hbm_to_vmem [thread:$0]  (!%p2368_p6), %s311_s21, 1024, %s313_s24, [#allocation9], %s3135_s25, %s3135_s25, %s3137_s26  }
  0x1a   : > { %s346_s20 = sshll.u32 %s2257_s19, 4  ;;  %s3153_s3 = sld [smem:[#allocation26_spill]]  ;;  %s347_s20 = int_to_ptr.vmem [resolvable:$true] %s346_s20 }
  0x1b   : > { %1832 = dma.hbm_to_vmem [thread:$0]  (!%p2368_p6), %s345_s17, 1024, %s347_s20, [#allocation12], %s3135_s25, %s3135_s25, %s3137_s26  }
  0x1c   : > { %s2258_s18 = smov [#allocation7]   ;;  %s2259_s24 = smov 192  }
  0x1d   : > { %s295_s21 = sshll.u32 %s2258_s18, 4  ;;  %s2260_s13 = smov 12   ;;  %s296_s21 = int_to_ptr.vmem [resolvable:$true] %s295_s21 }
  0x1e   : > { %s3154_s5 = sld [smem:[#allocation28_spill]]  ;;  %s2261_s17 = smov [#allocation10]  }
  0x1f   : > { %s329_s20 = sshll.u32 %s2261_s17, 4  ;;  %s361_s25 = sshll.u32 %s3132_s7, 4  ;;  %s330_s20 = int_to_ptr.vmem [resolvable:$true] %s329_s20  ;;  %s362_s25 = int_to_ptr.hbm [resolvable:$true] %s361_s25 }
  0x20   : > { %s293_s15 = sshll.u32 %s3153_s3, 4  ;;  %s1679_s14 = sadd.s32 4294967294, %s2251_s10   ;;  %s294_s15 = int_to_ptr.hbm [resolvable:$true] %s293_s15 }
  0x21   : > { %1823 = dma.hbm_to_vmem [thread:$0]  (!%p2368_p6), %s294_s15, 1536, %s296_s21, [#allocation6], %s2259_s24, %s2259_s24, %s2260_s13  }
  0x22   : > { %s3155_s15 = smov 128   ;;  %s2262_s21 = smov [#allocation13]  }
  0x23   : > { %s363_s24 = sshll.u32 %s2262_s21, 4  ;;  %s39_s13 = sadd.s32 1, %s2247_s9  ;;  %s364_s24 = int_to_ptr.vmem [resolvable:$true] %s363_s24 }
  0x24   : > { %s327_s19 = sshll.u32 %s3154_s5, 4  ;;  %p41_p7 = scmp.ge.s32.totalorder %s39_s13, 2  ;;  %s328_s19 = int_to_ptr.hbm [resolvable:$true] %s327_s19 }
  0x25   : > { %1829 = dma.hbm_to_vmem [thread:$0]  (!%p2368_p6), %s328_s19, 1024, %s330_s20, [#allocation9], %s3155_s15, %s3155_s15, %s3137_s26  }
  0x26   : > { %1835 = dma.hbm_to_vmem [thread:$0]  (!%p2368_p6), %s362_s25, 1024, %s364_s24, [#allocation12], %s3155_s15, %s3155_s15, %s3137_s26  }
  0x27   : > { %s48_s11 = sadd.s32 1, %s2239_s29  ;;  %p55_p8 = scmp.ne.s32.totalorder %s2239_s29, %s2235_s28 }
  0x28   : > { %s3179_s13 = smov (%p41_p7, %s39_s13), 0  ;;  %p56_p9 = scmp.eq.s32.totalorder %s2251_s10, 0 }
  0x29   : > { %p61_p10 = scmp.ne.s32.totalorder %s2235_s28, %s2231_s27  ;;  %s43_s19 = ssub.s32 %s2247_s9, %s3179_s13 }
  0x2a   : > { %s3156_s22 = sadd.s32 4294967295, %s2251_s10   ;;  %p46_p12 = scmp.eq.s32.totalorder %s43_s19, 0 }
  0x2b   : > { %p254_p11 = scmp.eq.s32.totalorder %s3156_s22, 1  ;;  %p2424_p13 = por %p2348_p1, %p61_p10 }
  0x2c   : > { %p260_p2 = scmp.eq.s32.totalorder %s1679_s14, 1  ;;  %p57_p5 = por %p56_p9, %p55_p8 }
  0x2d   : > { %p2428_p0 = por %p254_p11, %p55_p8  ;;  %s377_s18 = sand.u32 1, %s2239_s29  }
  0x2e   : > { %s2433_s20 = scalar_select %p46_p12, %s2239_s29, %s48_s11  }
  0x2f   : > { %p2435_p6 = por %p260_p2, %p61_p10  ;;  %s1762_s21 = sshll.u32 %s2247_s9, 6 }
  0x30   : > { %p1850_p7 = scmp.lt.s32.totalorder %s2251_s10, 2  ;;  %s1688_s24 = sshll.u32 %s377_s18, 6 }
  0x31   : > { %s388_s26 = scalar_lea.hbm %s3125_s0, %s1762_s21  ;;  %s381_s3 = scalar_lea.vmem [#allocation2], %s1688_s24 }
  0x32   : > { %s389_s1 = sshll.u32 %s388_s26, 4  ;;  %s391_s4 = sshll.u32 %s381_s3, 4  ;;  %s390_s1 = int_to_ptr.hbm [resolvable:$true] %s389_s1  ;;  %s392_s4 = int_to_ptr.vmem [resolvable:$true] %s391_s4 }
  0x33   : > { %p1837_p11 = pnand %p1850_p7, %p57_p5  ;;  %s378_s14 = scalar_lea.sflag [#allocation3], %s377_s18 }
  0x34   : > { %s3160_s11 = smov 8   ;;  %403 = sbr.rel (%p2356_p3) target bundleno = 892 (0x37c), region = 52 }
  0x35   : > { %1839 = dma.hbm_to_vmem [thread:$0]  (!%p1837_p11), %s390_s1, 1024, %s392_s4, %s378_s14, %s3155_s15, %s3155_s15, %s3160_s11  }
  0x39   : > { %s2451_s5 = sand.u32 1, %s2235_s28  }
  0x3a   : > { %s1692_s26 = sshll.u32 %s2451_s5, 6  ;;  %s406_s21 = scalar_lea.sflag [#allocation3], %s2451_s5 }
  0x3b   : > { %s409_s3 = scalar_lea.vmem [#allocation2], %s1692_s26 }
  0x3c   : > { %2210 = dma.done.wait (%p2424_p13), %s406_s21, 1024  }
  0x3d   : > { %2212 = vsyncadd (%p2424_p13), %s406_s21, 4294966272 }
  0x3e   : > { %2214 = dma.done.wait (%p2348_p1), [#allocation6], 1552  }
  0x3f   : > { %2216 = vsyncadd (%p2348_p1), [#allocation6], 4294965744 }
  0x40   : > { %2218 = dma.done.wait (%p2348_p1), [#allocation9], 2048  }
  0x41   : > { %2220 = vsyncadd (%p2348_p1), [#allocation9], 4294965248 }
  0x42   : > { %2222 = dma.done.wait (%p2348_p1), [#allocation12], 2048  }
  0x43   : > { %2224 = vsyncadd (%p2348_p1), [#allocation12], 4294965248  ;;  %vm488_vm0 = vcmask 523264   ;;  %v484_v0 = vld [vmem:[%s409_s3 + $0x20] sm:$0xff]  ;;  %v482_v1 = vld [vmem:[%s409_s3 + $0x10] sm:$0xff]  ;;  %s2263_s1 = smov 64  }
  0x44   : > { %v2471_v2 = vld [vmem:[%s409_s3] sm:$0xff]  ;;  %v501_v3 = vsel %vm488_vm0, %v484_v0, 0.0  ;;  %v495_v4 = vsel %vm488_vm0, %v482_v1, 0.0  ;;  %v485_v6 = vld [vmem:[%s409_s3 + $0x28] sm:$0xff]  ;;  %v483_v7 = vld [vmem:[%s409_s3 + $0x18] sm:$0xff]  ;;  %v2264_v24 = vmov 64.0  }
  0x45   : > { %v489_v5 = vsel %vm488_vm0, %v2471_v2, 0.0  ;;  %502 = vadd.xlane.f32.xlu1 %v501_v3  ;;  %496 = vadd.xlane.f32.xlu0 %v495_v4  ;;  %v481_v8 = vld [vmem:[%s409_s3 + $0x8] sm:$0xff]  ;;  %v504_v9 = vsel %vm488_vm0, %v485_v6, 0.0  ;;  %v498_v10 = vsel %vm488_vm0, %v483_v7, 0.0  ;;  %v2480_v12 = vld [vmem:[%s409_s3 + $0x30] sm:$0xff]  ;;  %v2482_v13 = vld [vmem:[%s409_s3 + $0x38] sm:$0xff]  ;;  %1924 = vrcp.f32 %v2264_v24 }
  0x46   : > { %490 = vadd.xlane.f32.xlu2 %v489_v5  ;;  %v492_v11 = vsel %vm488_vm0, %v481_v8, 0.0  ;;  %v507_v14 = vsel %vm488_vm0, %v2480_v12, 0.0  ;;  %v510_v15 = vsel %vm488_vm0, %v2482_v13, 0.0  ;;  %v2488_v16 = vld [vmem:[#allocation8 + $0x10] sm:$0xff]  ;;  %v2490_v17 = vld [vmem:[#allocation8 + $0x8] sm:$0xff]  ;;  %v2496_v18 = vld [vmem:[#allocation8] sm:$0xff] }
  0x47   : > { %v935_v19 = vld [vmem:[#allocation8 + $0x28] sm:$0xff]  ;;  %v934_v20 = vld [vmem:[#allocation8 + $0x20] sm:$0xff]  ;;  %v2502_v21 = vld [vmem:[#allocation8 + $0x18] sm:$0xff]  ;;  %s2265_s16 = smov 32   ;;  %s1787_s15 = smul.u32 96, %s2451_s5 }
  0x48   : > { %v937_v22 = vld [vmem:[#allocation8 + $0x38] sm:$0xff]  ;;  %v936_v23 = vld [vmem:[#allocation8 + $0x30] sm:$0xff]  ;;  %v947_v62 = vld [vmem:[#allocation11 + $0x8] sm:$0xff]  ;;  %s2266_s18 = smov 96   ;;  %s1788_s24 = smul.u32 96, %s2243_s30 }
  0x49   : > { %v2547_v61 = vld [vmem:[#allocation11 + $0x10] sm:$0xff]  ;;  %v1739_v24 = vld [vmem:[#allocation7 + $0x54] sm:$0xf0]  ;;  %s2701_s25 = scalar_lea.vmem [#allocation14], %s1787_s15  ;;  %s1508_s26 = scalar_lea.sflag [#allocation4], %s2451_s5 }
  0x4a   : > { %s1522_s14 = scalar_lea.hbm %s3133_s8, %s1788_s24  ;;  %s1523_s30 = sshll.u32 %s2701_s25, 4  ;;  %s1524_s30 = int_to_ptr.vmem [resolvable:$true] %s1523_s30 }
  0x4b   : > { %v1925_v25 = vpop.eup %1924  ;;  %s1525_s11 = sshll.u32 %s1522_s14, 4  ;;  %s2177_s12 = scalar_lea.hbm %s3133_s8, 192  ;;  %s1526_s11 = int_to_ptr.hbm [resolvable:$true] %s1525_s11 }
  0x4c   : > { %v514_v26 = vmul.f32 64.0, %v1925_v25  ;;  %vm518_vm1 = vweird.f32 %v1925_v25  ;;  %s2171_s21 = sshra.s32 %s1526_s11, 4  ;;  %s2172_s21 = int_to_ptr.hbm [resolvable:$true] %s2171_s21 }
  0x4d   : > { %505 = vadd.xlane.f32.xlu1 %v504_v9  ;;  %499 = vadd.xlane.f32.xlu0 %v498_v10  ;;  %s2173_s3 = scalar_lea.hbm %s2172_s21, 96  ;;  %p2178_p9 = scmp.lt.s32.totalorder %s2172_s21, %s3133_s8 }
  0x4e   : > { %493 = vadd.xlane.f32.xlu2 %v492_v11  ;;  %v515_v27 = vsub.f32 1.0, %v514_v26  ;;  %v1774_v26 = vld [vmem:[#allocation7 + $0x58] sm:$0xf0]  ;;  %p2174_p1 = scmp.ne.s32.totalorder %s2172_s21, %s2173_s3  ;;  %p2179_p10 = scmp.lt.s32.totalorder %s2177_s12, %s2173_s3 }
  0x50   : > { %v516_v28 = vmul.f32 %v1925_v25, %v515_v27  ;;  %p2175_p3 = pnand %p2174_p1, %p2428_p0  ;;  %p2180_p12 = por %p2179_p10, %p2178_p9 }
  0x52   : > { %v517_v29 = vadd.f32 %v1925_v25, %v516_v28  ;;  %p2176_p8 = pneg %p2175_p3 }
  0x54   : > { %v2508_v30 = vsel %vm518_vm1, %v1925_v25, %v517_v29  ;;  %v1745_v25 = vld [vmem:[#allocation7 + $0x50] sm:$0xf]  ;;  %p2181_p13 = pnand %p2180_p12, %p2176_p8 }
  0x55   : > { %508 = vadd.xlane.f32.xlu1 %v507_v14  ;;  %511 = vadd.xlane.f32.xlu0 %v510_v15  ;;  %v1773_v15 = vld [vmem:[#allocation7 + $0x50] sm:$0xf0]  ;;  %v2580_v28 = vor.u32 %v1774_v26, %v1745_v25  ;;  %v1725_v29 = vld [vmem:[#allocation7 + $0x30] sm:$0xf] }
  0x57   : > { %1783 = vmatpush.bf16.msra.mxu2 %v2580_v28 }
  0x66   : > { %1079 = vrot.lane.b32.xlu2 %v2488_v16, %s2263_s1 }
  0x69   : > { %1077 = vrot.lane.b32.xlu0 %v2490_v17, %s2263_s1 }
  0x6e   : > { %1075 = vrot.lane.b32.xlu1 %v2496_v18, %s2263_s1  ;;  %1085 = vrot.lane.b32.xlu2 %v935_v19, %s2263_s1  ;;  %v1772_v19 = vld [vmem:[#allocation7 + $0x4c] sm:$0xf] }
  0x6f   : > { %v1742_v27 = vor.u32 %v1772_v19, %v1739_v24 }
  0x71   : > { %1083 = vrot.lane.b32.xlu0 %v934_v20, %s2263_s1  ;;  %1779 = vmatpush.bf16.msra.mxu1 %v1742_v27 }
  0x76   : > { %1081 = vrot.lane.b32.xlu1 %v2502_v21, %s2263_s1 }
  0x79   : > { %1089 = vrot.lane.b32.xlu0 %v937_v22, %s2263_s1 }
  0x7e   : > { %1087 = vrot.lane.b32.xlu1 %v936_v23, %s2263_s1 }
  0xb8   : > { %v503_v31 = vpop.xlane.xlu1 %502  ;;  %v497_v32 = vpop.xlane.xlu0 %496 }
  0xb9   : > { %v524_v33 = vmul.f32 %v2508_v30, %v503_v31  ;;  %v522_v34 = vmul.f32 %v2508_v30, %v497_v32  ;;  %v491_v35 = vpop.xlane.xlu2 %490  ;;  %v1770_v31 = vld [vmem:[#allocation7 + $0x38] sm:$0xf0]  ;;  %v1769_v32 = vld [vmem:[#allocation7 + $0x34] sm:$0xf] }
  0xba   : > { %v520_v48 = vmul.f32 %v2508_v30, %v491_v35  ;;  %v1733_v35 = vld [vmem:[#allocation7 + $0x38] sm:$0xf] }
  0xbb   : > { %v2512_v36 = vsub.f32 %v484_v0, %v524_v33  ;;  %v2514_v37 = vsub.f32 %v482_v1, %v522_v34  ;;  %v1726_v33 = vor.u32 %v1770_v31, %v1725_v29  ;;  %v1727_v34 = vld [vmem:[#allocation7 + $0x3c] sm:$0xf0] }
  0xbc   : > { %v2539_v55 = vsub.f32 %v2471_v2, %v520_v48  ;;  %v1715_v48 = vld [vmem:[#allocation7 + $0x24] sm:$0xf0] }
  0xbd   : > { %v540_v38 = vmul.f32 %v2512_v36, %v2512_v36  ;;  %v538_v39 = vmul.f32 %v2514_v37, %v2514_v37 }
  0xbe   : > { %v536_v59 = vmul.f32 %v2539_v55, %v2539_v55 }
  0xbf   : > { %v556_v40 = vsel %vm488_vm0, %v540_v38, 0.0  ;;  %v550_v41 = vsel %vm488_vm0, %v538_v39, 0.0  ;;  %v1771_v38 = vld [vmem:[#allocation7 + $0x40] sm:$0xf0]  ;;  %v1730_v39 = vor.u32 %v1769_v32, %v1727_v34 }
  0xc0   : > { %557 = vadd.xlane.f32.xlu1 %v556_v40  ;;  %v506_v42 = vpop.xlane.xlu1 %505  ;;  %v500_v43 = vpop.xlane.xlu0 %499  ;;  %551 = vadd.xlane.f32.xlu2 %v550_v41  ;;  %v544_v60 = vsel %vm488_vm0, %v536_v59, 0.0  ;;  %v2583_v40 = vor.u32 %v1771_v38, %v1733_v35 }
  0xc1   : > { %v525_v44 = vmul.f32 %v2508_v30, %v506_v42  ;;  %v523_v45 = vmul.f32 %v2508_v30, %v500_v43  ;;  %v494_v46 = vpop.xlane.xlu2 %493  ;;  %1780 = vmatpush.bf16.msra.mxu1 %v1730_v39  ;;  %v1713_v42 = vld [vmem:[#allocation7 + $0x18] sm:$0xf]  ;;  %v1767_v43 = vld [vmem:[#allocation7 + $0x20] sm:$0xf0] }
  0xc2   : > { %v521_v47 = vmul.f32 %v2508_v30, %v494_v46  ;;  %1784 = vmatpush.bf16.msra.mxu2 %v2583_v40 }
  0xc3   : > { %v2526_v49 = vsub.f32 %v485_v6, %v525_v44  ;;  %v2528_v50 = vsub.f32 %v483_v7, %v523_v45  ;;  %v1766_v44 = vld [vmem:[#allocation7 + $0x1c] sm:$0xf] }
  0xc4   : > { %v2530_v51 = vsub.f32 %v481_v8, %v521_v47  ;;  %v1714_v47 = vor.u32 %v1767_v43, %v1713_v42 }
  0xc5   : > { %v539_v52 = vmul.f32 %v2528_v50, %v2528_v50  ;;  %v541_v53 = vmul.f32 %v2526_v49, %v2526_v49 }
  0xc6   : > { %v537_v54 = vmul.f32 %v2530_v51, %v2530_v51 }
  0xc7   : > { %v553_v56 = vsel %vm488_vm0, %v539_v52, 0.0  ;;  %v559_v57 = vsel %vm488_vm0, %v541_v53, 0.0  ;;  %v1721_v52 = vld [vmem:[#allocation7 + $0x20] sm:$0xf]  ;;  %v1768_v53 = vld [vmem:[#allocation7 + $0x28] sm:$0xf0] }
  0xc8   : > { %554 = vadd.xlane.f32.xlu0 %v553_v56  ;;  %560 = vadd.xlane.f32.xlu2 %v559_v57  ;;  %v547_v58 = vsel %vm488_vm0, %v537_v54, 0.0  ;;  %v512_v63 = vpop.xlane.xlu0 %511  ;;  %v509_v1 = vpop.xlane.xlu1 %508  ;;  %v1718_v56 = vor.u32 %v1766_v44, %v1715_v48  ;;  %v2589_v57 = vor.u32 %v1768_v53, %v1721_v52 }
  0xc9   : > { %548 = vadd.xlane.f32.xlu1 %v547_v58  ;;  %v527_v0 = vmul.f32 %v2508_v30, %v512_v63  ;;  %v526_v3 = vmul.f32 %v2508_v30, %v509_v1  ;;  %v2570_v11 = vpop.permute.xlu2 %1079  ;;  %v1763_v63 = vld [vmem:[#allocation7 + $0x4] sm:$0xf] }
  0xca   : > { %1781 = vmatpush.bf16.msra.mxu1 %v1718_v56  ;;  %1785 = vmatpush.bf16.msra.mxu2 %v2589_v57 }
  0xcb   : > { %v2554_v2 = vsub.f32 %v2482_v13, %v527_v0  ;;  %v2560_v5 = vsub.f32 %v2480_v12, %v526_v3  ;;  %v1737_v12 = vld [vmem:[#allocation7 + $0x48] sm:$0xf]  ;;  %v1703_v0 = vld [vmem:[#allocation7 + $0xc] sm:$0xf0] }
  0xcc   : > { %v1738_v23 = vor.u32 %v1773_v15, %v1737_v12  ;;  %v1709_v3 = vld [vmem:[#allocation7 + $0x8] sm:$0xf] }
  0xcd   : > { %v543_v4 = vmul.f32 %v2554_v2, %v2554_v2  ;;  %v542_v7 = vmul.f32 %v2560_v5, %v2560_v5 }
  0xce   : > { %1775 = vmatpush.bf16.msra.mxu3 %v1738_v23  ;;  %847 = vmatpush.bf16.msra.mxu0 %v1738_v23 }
  0xcf   : > { %v565_v6 = vsel %vm488_vm0, %v543_v4, 0.0  ;;  %v562_v8 = vsel %vm488_vm0, %v542_v7, 0.0  ;;  %v1765_v4 = vld [vmem:[#allocation7 + $0x10] sm:$0xf0] }
  0xd0   : > { %545 = vadd.xlane.f32.xlu0 %v544_v60  ;;  %v1701_v60 = vld [vmem:[#allocation7] sm:$0xf]  ;;  %v2593_v7 = vor.u32 %v1765_v4, %v1709_v3 }
  0xd1   : > { %v2576_v20 = vpop.permute.xlu2 %1085 }
  0xd2   : > { %1776 = vmatpush.bf16.msra.mxu3 %v1726_v33  ;;  %848 = vmatpush.bf16.msra.mxu0 %v1726_v33 }
  0xd3   : > { %1786 = vmatpush.bf16.msra.mxu2 %v2593_v7 }
  0xd6   : > { %1777 = vmatpush.bf16.msra.mxu3 %v1714_v47  ;;  %849 = vmatpush.bf16.msra.mxu0 %v1714_v47 }
  0xdb   : > { %v2568_v10 = vpop.permute.xlu0 %1077 }
  0xe0   : > { %1327 = vrot.lane.b32.xlu2 %v2547_v61, %s2263_s1  ;;  %v2566_v9 = vpop.permute.xlu1 %1075 }
  0xe3   : > { %v2574_v14 = vpop.permute.xlu0 %1083 }
  0xe4   : > { %1325 = vrot.lane.b32.xlu0 %v947_v62, %s2263_s1  ;;  %v1764_v62 = vld [vmem:[#allocation7 + $0x8] sm:$0xf0] }
  0xe5   : > { %v1702_v1 = vor.u32 %v1764_v62, %v1701_v60 }
  0xe7   : > { %1778 = vmatpush.bf16.msra.mxu3 %v1702_v1  ;;  %850 = vmatpush.bf16.msra.mxu0 %v1702_v1  ;;  %v2616_v1 = vld [vmem:[#allocation11 + $0x18] sm:$0xff] }
  0xe8   : > { %v2572_v13 = vpop.permute.xlu1 %1081 }
  0xeb   : > { %v2585_v41 = vpop.permute.xlu0 %1089  ;;  %876 = vmatpush.bf16.msrb.mxu0 %v1742_v27 }
  0xec   : > { %3161 = vst [vmem:[#allocation20_spill] sm:$0xff] %v2585_v41 }
  0xef   : > { %877 = vmatpush.bf16.msrb.mxu0 %v1730_v39 }
  0xf0   : > { %v2578_v22 = vpop.permute.xlu1 %1087 }
  0xf3   : > { %878 = vmatpush.bf16.msrb.mxu0 %v1718_v56 }
 0x109   : > { %566 = vadd.xlane.f32.xlu2 %v565_v6  ;;  %v1706_v6 = vor.u32 %v1763_v63, %v1703_v0 }
 0x10b   : > { %1782 = vmatpush.bf16.msra.mxu1 %v1706_v6  ;;  %879 = vmatpush.bf16.msrb.mxu0 %v1706_v6 }
 0x10e   : > { %563 = vadd.xlane.f32.xlu0 %v562_v8 }
 0x122   : > { %1329 = vrot.lane.b32.xlu0 %v2616_v1, %s2263_s1 }
 0x133   : > { %v558_v45 = vpop.xlane.xlu1 %557  ;;  %v552_v46 = vpop.xlane.xlu2 %551 }
 0x134   : > { %v570_v54 = vmul.f32 %v552_v46, %v2508_v30  ;;  %v572_v58 = vmul.f32 %v558_v45, %v2508_v30 }
 0x136   : > { %v578_v59 = vadd.f32 1e-05, %v570_v54  ;;  %v2595_v8 = vadd.f32 1e-05, %v572_v58 }
 0x138   : > { %1926 = vrsqrt.f32 %v578_v59  ;;  %vm610_vm3 = vweird.f32 %v578_v59  ;;  %vm630_vm14 = vweird.f32 %v2595_v8 }
 0x139   : > { %1928 = vrsqrt.f32 %v2595_v8 }
 0x13b   : > { %v555_v12 = vpop.xlane.xlu0 %554  ;;  %v561_v15 = vpop.xlane.xlu2 %560 }
 0x13c   : > { %v571_v19 = vmul.f32 %v555_v12, %v2508_v30  ;;  %v549_v23 = vpop.xlane.xlu1 %548  ;;  %v573_v24 = vmul.f32 %v561_v15, %v2508_v30 }
 0x13d   : > { %v569_v25 = vmul.f32 %v549_v23, %v2508_v30 }
 0x13e   : > { %v579_v26 = vadd.f32 1e-05, %v571_v19  ;;  %v2602_v29 = vadd.f32 1e-05, %v573_v24  ;;  %v1927_v31 = vpop.eup %1926  ;;  %v2621_v19 = vld [vmem:[#allocation5] ss:$0 sm:$0xff] }
 0x13f   : > { %v577_v32 = vadd.f32 1e-05, %v569_v25  ;;  %v605_v33 = vmul.f32 %v1927_v31, %v578_v59  ;;  %v2605_v38 = vpop.eup %1928  ;;  %vm611_vm2 = vweird.f32 %v1927_v31 }
 0x140   : > { %1930 = vrsqrt.f32 %v579_v26  ;;  %v625_v47 = vmul.f32 %v2605_v38, %v2595_v8  ;;  %vm612_vm4 = vmor %vm610_vm3, %vm611_vm2  ;;  %vm620_vm6 = vweird.f32 %v579_v26  ;;  %vm640_vm11 = vweird.f32 %v2602_v29 }
 0x141   : > { %1932 = vrsqrt.f32 %v577_v32  ;;  %v606_v34 = vmul.f32 %v1927_v31, %v605_v33  ;;  %vm600_vm7 = vweird.f32 %v577_v32  ;;  %vm631_vm1 = vweird.f32 %v2605_v38 }
 0x142   : > { %1934 = vrsqrt.f32 %v2602_v29  ;;  %v626_v60 = vmul.f32 %v2605_v38, %v625_v47 }
 0x143   : > { %v546_v35 = vpop.xlane.xlu0 %545  ;;  %v607_v27 = vmul.f32 0.5, %v606_v34 }
 0x144   : > { %v568_v42 = vmul.f32 %v546_v35, %v2508_v30  ;;  %v627_v23 = vmul.f32 0.5, %v626_v60 }
 0x145   : > { %v608_v44 = vsub.f32 1.5, %v607_v27 }
 0x146   : > { %v1931_v43 = vpop.eup %1930  ;;  %v576_v45 = vadd.f32 1e-05, %v568_v42 }
 0x147   : > { %v1933_v46 = vpop.eup %1932  ;;  %v615_v39 = vmul.f32 %v1931_v43, %v579_v26  ;;  %v609_v52 = vmul.f32 %v1927_v31, %v608_v44  ;;  %vm621_vm5 = vweird.f32 %v1931_v43  ;;  %v2629_v26 = vld [vmem:[%s3127_s2] ss:$0 sm:$0xff] }
 0x148   : > { %v2610_v48 = vpop.eup %1934  ;;  %v595_v53 = vmul.f32 %v1933_v46, %v577_v32  ;;  %1936 = vrsqrt.f32 %v576_v45  ;;  %vm601_vm8 = vweird.f32 %v1933_v46  ;;  %vm622_vm9 = vmor %vm620_vm6, %vm621_vm5  ;;  %v628_v32 = vsub.f32 1.5, %v627_v23 }
 0x149   : > { %v616_v54 = vmul.f32 %v1931_v43, %v615_v39  ;;  %v635_v56 = vmul.f32 %v2610_v48, %v2602_v29  ;;  %v613_v62 = vsel %vm612_vm4, %v1927_v31, %v609_v52  ;;  %vm602_vm10 = vmor %vm600_vm7, %vm601_vm8  ;;  %vm641_vm12 = vweird.f32 %v2610_v48 }
 0x14a   : > { %v596_v58 = vmul.f32 %v1933_v46, %v595_v53  ;;  %v666_v12 = vmul.f32 %v613_v62, %v2514_v37  ;;  %vm2636_vm15 = vmor %vm640_vm11, %vm641_vm12  ;;  %v629_v53 = vmul.f32 %v2605_v38, %v628_v32  ;;  %vm590_vm2 = vweird.f32 %v576_v45 }
 0x14b   : > { %v617_v63 = vmul.f32 0.5, %v616_v54  ;;  %v636_v0 = vmul.f32 %v2610_v48, %v635_v56  ;;  %vm632_vm4 = vmor %vm630_vm14, %vm631_vm1  ;;  %v697_v32 = vlaneseq  ;;  %vm1042_vm12 = vcmask 261120  }
 0x14c   : > { %v597_v3 = vmul.f32 0.5, %v596_v58  ;;  %v678_v37 = vmul.f32 %v2621_v19, %v666_v12  ;;  %v633_v62 = vsel %vm632_vm4, %v2605_v38, %v629_v53 }
 0x14d   : > { %v618_v4 = vsub.f32 1.5, %v617_v63  ;;  %v637_v59 = vmul.f32 0.5, %v636_v0 }
 0x14e   : > { %v1937_v6 = vpop.eup %1936  ;;  %v598_v15 = vsub.f32 1.5, %v597_v3  ;;  %v690_v52 = vadd.f32 %v2629_v26, %v678_v37  ;;  %v2658_v3 = vld [vmem:[#allocation11] sm:$0xff] }
 0x14f   : > { %v619_v24 = vmul.f32 %v1931_v43, %v618_v4  ;;  %v585_v25 = vmul.f32 %v1937_v6, %v576_v45  ;;  %v638_v34 = vsub.f32 1.5, %v637_v59  ;;  %vm591_vm13 = vweird.f32 %v1937_v6  ;;  %1323 = vrot.lane.b32.xlu1 %v2658_v3, %s2263_s1 }
 0x150   : > { %v599_v31 = vmul.f32 %v1933_v46, %v598_v15  ;;  %vm592_vm3 = vmor %vm590_vm2, %vm591_vm13 }
 0x151   : > { %v623_v33 = vsel %vm622_vm9, %v1931_v43, %v619_v24  ;;  %v586_v35 = vmul.f32 %v1937_v6, %v585_v25  ;;  %v639_v47 = vmul.f32 %v2610_v48, %v638_v34 }
 0x152   : > { %v667_v27 = vmul.f32 %v623_v33, %v2528_v50  ;;  %v603_v42 = vsel %vm602_vm10, %v1933_v46, %v599_v31 }
 0x153   : > { %v587_v44 = vmul.f32 0.5, %v586_v35  ;;  %v665_v29 = vmul.f32 %v603_v42, %v2530_v51  ;;  %v643_v51 = vsel %vm2636_vm15, %v2610_v48, %v639_v47  ;;  %v668_v48 = vmul.f32 %v633_v62, %v2512_v36 }
 0x154   : > { %v679_v43 = vmul.f32 %v2621_v19, %v667_v27  ;;  %v669_v45 = vmul.f32 %v643_v51, %v2526_v49 }
 0x155   : > { %v588_v50 = vsub.f32 1.5, %v587_v44  ;;  %v677_v60 = vmul.f32 %v2621_v19, %v665_v29  ;;  %v680_v49 = vmul.f32 %v2621_v19, %v668_v48 }
 0x156   : > { %v691_v46 = vadd.f32 %v2629_v26, %v679_v43  ;;  %v681_v38 = vmul.f32 %v2621_v19, %v669_v45  ;;  %v2677_v12 = vpop.permute.xlu0 %1325 }
 0x157   : > { %v589_v54 = vmul.f32 %v1937_v6, %v588_v50  ;;  %v692_v59 = vadd.f32 %v2629_v26, %v680_v49 }
 0x158   : > { %v748_v56 = vpack.c.bf16 %v691_v46, %v690_v52  ;;  %v693_v36 = vadd.f32 %v2629_v26, %v681_v38 }
 0x159   : > { %v593_v8 = vsel %vm592_vm3, %v1937_v6, %v589_v54 }
 0x15a   : > { %v664_v58 = vmul.f32 %v593_v8, %v2539_v55  ;;  %1748 = vmatmul.msk.bf16.vlgmr.msra.gmra.mxu3 %vm488_vm0, %v748_v56  ;;  %1752 = vmatmul.msk.bf16.vlgmr.msra.gmra.mxu1 %vm488_vm0, %v748_v56  ;;  %v689_v55 = vadd.f32 %v2629_v26, %v677_v60  ;;  %v749_v6 = vpack.c.bf16 %v693_v36, %v692_v59 }
 0x15b   : > { %1756 = vmatmul.msk.bf16.vlgmr.msra.gmra.mxu2 %vm488_vm0, %v748_v56 }
 0x15c   : > { %v676_v63 = vmul.f32 %v2621_v19, %v664_v58 }
 0x15e   : > { %v688_v0 = vadd.f32 %v2629_v26, %v676_v63 }
 0x160   : > { %v747_v4 = vpack.c.bf16 %v689_v55, %v688_v0 }
 0x162   : > { %1747 = vmatmul.msk.bf16.vlgmr.msra.gmra.mxu0 %vm488_vm0, %v747_v4 }
 0x163   : > { %905 = vmatpush.bf16.msra.mxu0 %v2580_v28  ;;  %v2675_v28 = vpop.permute.xlu2 %1327 }
 0x167   : > { %906 = vmatpush.bf16.msra.mxu0 %v2583_v40 }
 0x16a   : > { %1749 = vmatmul.msk.bf16.gmra.mxu3 %vm488_vm0, %v749_v6  ;;  %1753 = vmatmul.msk.bf16.gmra.mxu1 %vm488_vm0, %v749_v6 }
 0x16b   : > { %1757 = vmatmul.msk.bf16.gmra.mxu2 %vm488_vm0, %v749_v6  ;;  %907 = vmatpush.bf16.msra.mxu0 %v2589_v57 }
 0x16f   : > { %908 = vmatpush.bf16.msra.mxu0 %v2593_v7 }
 0x172   : > { %1751 = vmatmul.msk.bf16.vlgmr.msrb.gmra.mxu0 %vm488_vm0, %v747_v4 }
 0x17c   : > { %v567_v15 = vpop.xlane.xlu2 %566 }
 0x17d   : > { %v575_v40 = vmul.f32 %v567_v15, %v2508_v30 }
 0x17f   : > { %v583_v23 = vadd.f32 1e-05, %v575_v40 }
 0x181   : > { %1938 = vrsqrt.f32 %v583_v23  ;;  %v564_v24 = vpop.xlane.xlu0 %563  ;;  %vm660_vm6 = vweird.f32 %v583_v23 }
 0x182   : > { %v574_v25 = vmul.f32 %v564_v24, %v2508_v30  ;;  %1755 = vmatmul.msk.bf16.vlgmr.msra.gmra.mxu0 %vm488_vm0, %v747_v4  ;;  %v698_v30 = vshrl.u32 %v697_v32, 7 }
 0x184   : > { %v582_v31 = vadd.f32 1e-05, %v574_v25  ;;  %v705_v46 = vadd.s32 56, %v698_v30 }
 0x186   : > { %1940 = vrsqrt.f32 %v582_v31  ;;  %vm650_vm9 = vweird.f32 %v582_v31  ;;  %vm722_vm11 = vcmp.lt.s32.totalorder %v705_v46, 60 }
 0x187   : > { %v1939_v57 = vpop.eup %1938 }
 0x188   : > { %v655_v7 = vmul.f32 %v1939_v57, %v583_v23  ;;  %vm661_vm5 = vweird.f32 %v1939_v57 }
 0x189   : > { %vm662_vm7 = vmor %vm660_vm6, %vm661_vm5 }
 0x18a   : > { %v656_v33 = vmul.f32 %v1939_v57, %v655_v7 }
 0x18c   : > { %v1941_v34 = vpop.eup %1940  ;;  %v657_v35 = vmul.f32 0.5, %v656_v33 }
 0x18d   : > { %v645_v27 = vmul.f32 %v1941_v34, %v582_v31  ;;  %vm651_vm8 = vweird.f32 %v1941_v34 }
 0x18e   : > { %v658_v37 = vsub.f32 1.5, %v657_v35  ;;  %vm652_vm10 = vmor %vm650_vm9, %vm651_vm8 }
 0x18f   : > { %v646_v42 = vmul.f32 %v1941_v34, %v645_v27 }
 0x190   : > { %v659_v44 = vmul.f32 %v1939_v57, %v658_v37 }
 0x191   : > { %v647_v43 = vmul.f32 0.5, %v646_v42 }
 0x192   : > { %v663_v47 = vsel %vm662_vm7, %v1939_v57, %v659_v44 }
 0x193   : > { %v671_v50 = vmul.f32 %v663_v47, %v2554_v2  ;;  %v648_v29 = vsub.f32 1.5, %v647_v43 }
 0x195   : > { %v649_v39 = vmul.f32 %v1941_v34, %v648_v29  ;;  %v683_v52 = vmul.f32 %v2621_v19, %v671_v50 }
 0x197   : > { %v653_v53 = vsel %vm652_vm10, %v1941_v34, %v649_v39  ;;  %v695_v56 = vadd.f32 %v2629_v26, %v683_v52 }
 0x198   : > { %v670_v54 = vmul.f32 %v653_v53, %v2560_v5 }
 0x199   : > { %v746_v2 = vsel %vm722_vm11, %v695_v56, 0.0  ;;  %v2802_v56 = vpop.permute.xlu0 %1329 }
 0x19a   : > { %v682_v51 = vmul.f32 %v2621_v19, %v670_v54 }
 0x19c   : > { %v694_v8 = vadd.f32 %v2629_v26, %v682_v51 }
 0x19e   : > { %v750_v58 = vpack.c.bf16 %v746_v2, %v694_v8 }
 0x1a0   : > { %1750 = vmatmul.msk.bf16.gmra.mxu3 %vm488_vm0, %v750_v58  ;;  %1754 = vmatmul.msk.bf16.gmra.mxu1 %vm488_vm0, %v750_v58 }
 0x1a1   : > { %1758 = vmatmul.msk.bf16.gmra.mxu2 %vm488_vm0, %v750_v58 }
 0x1c1   : > { %v2797_v46 = vpop.permute.xlu1 %1323 }
 0x1d7   : > { %v2691_v60 = vpop.f32.mrf.mxu1 }
 0x1d8   : > { %1271 = vrot.lane.b32.xlu1 %v2691_v60, %s2265_s16  ;;  %v1221_v0 = vsub.f32 0.0, %v2691_v60 }
 0x1dd   : > { %v2711_v55 = vpop.f32.mrf.mxu3 }
 0x1de   : > { %v915_v5 = vpop.f32.mrf.mxu2  ;;  %v972_v23 = vsub.f32 0.0, %v2711_v55 }
 0x1df   : > { %v1480_v19 = vpack.c.bf16 %v915_v5, %v915_v5  ;;  %v2696_v62 = vpop.f32.mrf.mxu0  ;;  %v2734_v40 = vpop.f32.mrf.mxu1  ;;  %v2814_v5 = vld [vmem:[#allocation10] sm:$0xff] }
 0x1e0   : > { %1018 = vrot.lane.b32.xlu0 %v2696_v62, %s2265_s16  ;;  %v970_v26 = vsub.f32 0.0, %v2696_v62  ;;  %v1222_v31 = vsub.f32 0.0, %v2734_v40 }
 0x1e1   : > { %1496 = vst [vmem:[%s2701_s25 + $0x20] sm:$0xf] %v1480_v19 }
 0x1e2   : > { %1107 = vrot.lane.b32.xlu2 %v970_v26, %s2265_s16  ;;  %986 = vrot.lane.b32.xlu1 %v970_v26, %s2266_s18 }
 0x1e5   : > { %v2755_v35 = vpop.f32.mrf.mxu3 }
 0x1e6   : > { %v917_v45 = vpop.f32.mrf.mxu2  ;;  %v973_v27 = vsub.f32 0.0, %v2755_v35 }
 0x1e7   : > { %v1482_v63 = vpack.c.bf16 %v917_v45, %v917_v45  ;;  %v2706_v48 = vpop.f32.mrf.mxu0  ;;  %v2744_v33 = vpop.f32.mrf.mxu1 }
 0x1e8   : > { %1131 = vrot.lane.b32.xlu0 %v2696_v62, %s2266_s18  ;;  %v971_v15 = vsub.f32 0.0, %v2706_v48  ;;  %v1223_v34 = vsub.f32 0.0, %v2744_v33 }
 0x1e9   : > { %1498 = vst [vmem:[%s2701_s25 + $0x2c] sm:$0xf] %v1482_v63 }
 0x1ea   : > { %1359 = vrot.lane.b32.xlu2 %v1221_v0, %s2265_s16  ;;  %1022 = vrot.lane.b32.xlu1 %v2711_v55, %s2265_s16 }
 0x1ed   : > { %v2763_v32 = vpop.f32.mrf.mxu3 }
 0x1ee   : > { %v920_v4 = vpop.f32.mrf.mxu2  ;;  %v974_v42 = vsub.f32 0.0, %v2763_v32 }
 0x1ef   : > { %v1484_v38 = vpack.c.bf16 %v920_v4, %v920_v4  ;;  %v2717_v49 = vpop.f32.mrf.mxu0  ;;  %v2778_v50 = vpop.f32.mrf.mxu1 }
 0x1f0   : > { %1383 = vrot.lane.b32.xlu0 %v2691_v60, %s2266_s18  ;;  %v1219_v37 = vsub.f32 0.0, %v2717_v49  ;;  %v1224_v39 = vsub.f32 0.0, %v2778_v50 }
 0x1f1   : > { %1500 = vst [vmem:[%s2701_s25 + $0x38] sm:$0xf] %v1484_v38 }
 0x1f2   : > { %1020 = vrot.lane.b32.xlu2 %v2706_v48, %s2265_s16  ;;  %1135 = vrot.lane.b32.xlu1 %v2711_v55, %s2266_s18 }
 0x1f5   : > { %v2800_v54 = vpop.f32.mrf.mxu3 }
 0x1f6   : > { %v922_v36 = vpop.f32.mrf.mxu2  ;;  %v975_v2 = vsub.f32 0.0, %v2800_v54 }
 0x1f7   : > { %v1486_v59 = vpack.c.bf16 %v922_v36, %v922_v36  ;;  %v2726_v6 = vpop.f32.mrf.mxu0 }
 0x1f8   : > { %1239 = vrot.lane.b32.xlu0 %v1221_v0, %s2266_s18  ;;  %v1220_v52 = vsub.f32 0.0, %v2726_v6  ;;  %v962_v0 = vmul.f32 %v2496_v18, %v2696_v62 }
 0x1f9   : > { %1502 = vst [vmem:[%s2701_s25 + $0x44] sm:$0xf] %v1486_v59 }
 0x1fa   : > { %1133 = vrot.lane.b32.xlu2 %v2706_v48, %s2266_s18  ;;  %1109 = vrot.lane.b32.xlu1 %v971_v15, %s2265_s16 }
 0x1ff   : > { %v910_v24 = vpop.f32.mrf.mxu0 }
 0x200   : > { %v1476_v25 = vpack.c.bf16 %v910_v24, %v910_v24  ;;  %990 = vrot.lane.b32.xlu0 %v972_v23, %s2266_s18 }
 0x202   : > { %1492 = vst [vmem:[%s2701_s25 + $0x8] sm:$0xf] %v1476_v25  ;;  %1385 = vrot.lane.b32.xlu2 %v2734_v40, %s2266_s18  ;;  %1361 = vrot.lane.b32.xlu1 %v1222_v31, %s2265_s16 }
 0x207   : > { %v912_v57 = vpop.f32.mrf.mxu0 }
 0x208   : > { %v1478_v7 = vpack.c.bf16 %v912_v57, %v912_v57  ;;  %1111 = vrot.lane.b32.xlu0 %v972_v23, %s2265_s16 }
 0x20a   : > { %1494 = vst [vmem:[%s2701_s25 + $0x14] sm:$0xf] %v1478_v7  ;;  %988 = vrot.lane.b32.xlu2 %v971_v15, %s2266_s18  ;;  %1387 = vrot.lane.b32.xlu1 %v2744_v33, %s2266_s18 }
 0x210   : > { %1273 = vrot.lane.b32.xlu0 %v2734_v40, %s2265_s16 }
 0x212   : > { %1241 = vrot.lane.b32.xlu2 %v1222_v31, %s2266_s18  ;;  %1243 = vrot.lane.b32.xlu1 %v1223_v34, %s2266_s18  ;;  %v939_v31 = vld [vmem:[#allocation10 + $0x8] sm:$0xff] }
 0x218   : > { %1024 = vrot.lane.b32.xlu0 %v2755_v35, %s2265_s16 }
 0x21a   : > { %992 = vrot.lane.b32.xlu2 %v973_v27, %s2266_s18  ;;  %1355 = vrot.lane.b32.xlu1 %v1219_v37, %s2265_s16 }
 0x21d   : > { %v2818_v45 = vpop.f32.mrf.mxu1 }
 0x21e   : > { %v1225_v36 = vsub.f32 0.0, %v2818_v45 }
 0x220   : > { %1137 = vrot.lane.b32.xlu0 %v2755_v35, %s2266_s18 }
 0x222   : > { %1113 = vrot.lane.b32.xlu2 %v973_v27, %s2265_s16  ;;  %994 = vrot.lane.b32.xlu1 %v974_v42, %s2266_s18  ;;  %v963_v27 = vmul.f32 %v2490_v17, %v2706_v48  ;;  %v1213_v17 = vmul.f32 %v2547_v61, %v2691_v60 }
 0x224   : > { %v925_v44 = vpop.f32.mrf.mxu2 }
 0x225   : > { %v1488_v43 = vpack.c.bf16 %v925_v44, %v925_v44  ;;  %v2836_v18 = vpop.f32.mrf.mxu1 }
 0x226   : > { %3164 = vst [vmem:[#allocation21_spill] sm:$0xff] %v2836_v18 }
 0x227   : > { %1504 = vst [vmem:[%s2701_s25 + $0x50] sm:$0xf] %v1488_v43  ;;  %v1226_v43 = vsub.f32 0.0, %v2836_v18 }
 0x228   : > { %1267 = vrot.lane.b32.xlu0 %v2717_v49, %s2265_s16 }
 0x22a   : > { %1275 = vrot.lane.b32.xlu2 %v2744_v33, %s2265_s16  ;;  %1115 = vrot.lane.b32.xlu1 %v974_v42, %s2265_s16  ;;  %v2850_v42 = vpop.f32.mrf.mxu3 }
 0x22c   : > { %v927_v47 = vpop.f32.mrf.mxu2 }
 0x22d   : > { %v1490_v30 = vpack.c.bf16 %v927_v47, %v927_v47 }
 0x22f   : > { %1506 = vst [vmem:[%s2701_s25 + $0x5c] sm:$0xf] %v1490_v30  ;;  %v2859_v30 = vld [vmem:[#allocation13 + $0x10] sm:$0xff] }
 0x230   : > { %1363 = vrot.lane.b32.xlu0 %v1223_v34, %s2265_s16 }
 0x232   : > { %1379 = vrot.lane.b32.xlu2 %v2717_v49, %s2266_s18  ;;  %1277 = vrot.lane.b32.xlu1 %v2778_v50, %s2265_s16 }
 0x238   : > { %1389 = vrot.lane.b32.xlu0 %v2778_v50, %s2266_s18 }
 0x23a   : > { %1235 = vrot.lane.b32.xlu2 %v1219_v37, %s2266_s18  ;;  %1381 = vrot.lane.b32.xlu1 %v2726_v6, %s2266_s18 }
 0x23c   : > { %v2789_v29 = vpop.permute.xlu2 %1107 }
 0x240   : > { %1245 = vrot.lane.b32.xlu0 %v1224_v39, %s2266_s18 }
 0x242   : > { %1026 = vrot.lane.b32.xlu2 %v2763_v32, %s2265_s16  ;;  %1237 = vrot.lane.b32.xlu1 %v1220_v52, %s2266_s18 }
 0x244   : > { %v1360_v53 = vpop.permute.xlu2 %1359 }
 0x248   : > { %1357 = vrot.lane.b32.xlu0 %v1220_v52, %s2265_s16 }
 0x24a   : > { %1139 = vrot.lane.b32.xlu2 %v2763_v32, %s2266_s18  ;;  %1028 = vrot.lane.b32.xlu1 %v2800_v54, %s2265_s16  ;;  %v1272_v51 = vpop.permute.xlu1 %1271 }
 0x24c   : > { %v1021_v8 = vpop.permute.xlu2 %1020 }
 0x250   : > { %996 = vrot.lane.b32.xlu0 %v975_v2, %s2266_s18 }
 0x252   : > { %v1019_v58 = vpop.permute.xlu0 %1018  ;;  %1269 = vrot.lane.b32.xlu2 %v2726_v6, %s2265_s16  ;;  %1141 = vrot.lane.b32.xlu1 %v2800_v54, %s2266_s18 }
 0x254   : > { %v987_v19 = vpop.permute.xlu1 %986  ;;  %v2816_v26 = vpop.permute.xlu2 %1133 }
 0x255   : > { %v1043_v63 = vsel %vm1042_vm12, %v987_v19, %v1019_v58  ;;  %v976_v58 = vsub.f32 0.0, %v2850_v42  ;;  %v2870_v19 = vld [vmem:[#allocation10 + $0x10] sm:$0xff] }
 0x256   : > { %v1051_v4 = vmul.f32 %v1043_v63, %v2814_v5  ;;  %v2872_v63 = vld [vmem:[#allocation11 + $0x28] sm:$0xff] }
 0x258   : > { %v2824_v38 = vadd.f32 %v1051_v4, %v962_v0  ;;  %1117 = vrot.lane.b32.xlu0 %v975_v2, %s2265_s16 }
 0x25a   : > { %v2828_v59 = vpop.permute.xlu0 %1131  ;;  %1365 = vrot.lane.b32.xlu2 %v1224_v39, %s2265_s16  ;;  %1367 = vrot.lane.b32.xlu1 %v1225_v36, %s2265_s16 }
 0x25b   : > { %v1155_v41 = vsel %vm1042_vm12, %v2789_v29, %v2828_v59  ;;  %v965_v59 = vmul.f32 %v2502_v21, %v2755_v35 }
 0x25c   : > { %v1023_v15 = vpop.permute.xlu1 %1022  ;;  %v2832_v23 = vpop.permute.xlu2 %1385 }
 0x260   : > { %1279 = vrot.lane.b32.xlu0 %v2818_v45, %s2265_s16 }
 0x262   : > { %v1384_v24 = vpop.permute.xlu0 %1383  ;;  %1391 = vrot.lane.b32.xlu2 %v2818_v45, %s2266_s18  ;;  %1393 = vrot.lane.b32.xlu1 %v2836_v18, %s2266_s18 }
 0x263   : > { %v2843_v25 = vsel %vm1042_vm12, %v1360_v53, %v1384_v24 }
 0x264   : > { %v2845_v57 = vpop.permute.xlu1 %1135  ;;  %v989_v7 = vpop.permute.xlu2 %988 }
 0x265   : > { %v1044_v34 = vsel %vm1042_vm12, %v989_v7, %v1021_v8  ;;  %v2881_v7 = vpop.f32.mrf.mxu3 }
 0x266   : > { %v1052_v37 = vmul.f32 %v1044_v34, %v939_v31  ;;  %3165 = vst [vmem:[#allocation22_spill] sm:$0xff] %v2881_v7 }
 0x268   : > { %v2852_v44 = vadd.f32 %v1052_v37, %v963_v27  ;;  %1030 = vrot.lane.b32.xlu0 %v2850_v42, %s2265_s16  ;;  %v977_v27 = vsub.f32 0.0, %v2881_v7 }
 0x26a   : > { %v1240_v47 = vpop.permute.xlu0 %1239  ;;  %1247 = vrot.lane.b32.xlu2 %v1225_v36, %s2266_s18  ;;  %1249 = vrot.lane.b32.xlu1 %v1226_v43, %s2266_s18 }
 0x26b   : > { %v1293_v39 = vsel %vm1042_vm12, %v1240_v47, %v1272_v51  ;;  %v964_v51 = vmul.f32 %v2488_v16, %v2711_v55  ;;  %v2891_v47 = vld [vmem:[#allocation11 + $0x30] sm:$0xff] }
 0x26c   : > { %v1301_v52 = vmul.f32 %v1293_v39, %v2859_v30  ;;  %v1110_v53 = vpop.permute.xlu1 %1109  ;;  %v1242_v8 = vpop.permute.xlu2 %1241  ;;  %3166 = vst [vmem:[#allocation23_spill] sm:$0xff] %v2891_v47 }
 0x26e   : > { %v2865_v2 = vadd.f32 %v1301_v52, %v1213_v17  ;;  %v957_v17 = vld [vmem:[#allocation13 + $0x18] sm:$0xff] }
 0x270   : > { %1143 = vrot.lane.b32.xlu0 %v2850_v42, %s2266_s18 }
 0x272   : > { %v991_v0 = vpop.permute.xlu0 %990  ;;  %1333 = vrot.lane.b32.xlu1 %v2872_v63, %s2263_s1  ;;  %998 = vrot.lane.b32.xlu2 %v976_v58, %s2266_s18 }
 0x273   : > { %v1045_v61 = vsel %vm1042_vm12, %v991_v0, %v1023_v15  ;;  %v1214_v0 = vmul.f32 %v2616_v1, %v2734_v40 }
 0x274   : > { %v1053_v4 = vmul.f32 %v1045_v61, %v2870_v19  ;;  %v1362_v36 = vpop.permute.xlu1 %1361  ;;  %v993_v24 = vpop.permute.xlu2 %992 }
 0x276   : > { %v2883_v34 = vadd.f32 %v1053_v4, %v964_v51 }
 0x278   : > { %1369 = vrot.lane.b32.xlu0 %v1226_v43, %s2265_s16  ;;  %v1156_v43 = vsel %vm1042_vm12, %v1110_v53, %v2816_v26  ;;  %v1163_v53 = vmul.f32 %v1155_v41, %v2814_v5  ;;  %v1406_v41 = vsel %vm1042_vm12, %v1362_v36, %v2832_v23  ;;  %v954_v23 = vld [vmem:[#allocation13] sm:$0xff] }
 0x27a   : > { %v2887_v37 = vpop.permute.xlu0 %1111  ;;  %1119 = vrot.lane.b32.xlu2 %v976_v58, %s2265_s16  ;;  %1000 = vrot.lane.b32.xlu1 %v977_v27, %s2266_s18  ;;  %v958_v58 = vld [vmem:[#allocation13 + $0x20] sm:$0xff] }
 0x27c   : > { %v1388_v15 = vpop.permute.xlu1 %1387  ;;  %v1114_v16 = vpop.permute.xlu2 %1113 }
 0x280   : > { %1335 = vrot.lane.b32.xlu0 %v2891_v47, %s2263_s1 }
 0x282   : > { %v1274_v39 = vpop.permute.xlu0 %1273  ;;  %1281 = vrot.lane.b32.xlu2 %v2836_v18, %s2265_s16  ;;  %1121 = vrot.lane.b32.xlu1 %v977_v27, %s2265_s16  ;;  %v1164_v27 = vmul.f32 %v1156_v43, %v939_v31  ;;  %v1414_v43 = vmul.f32 %v1406_v41, %v957_v17 }
 0x283   : > { %v1294_v52 = vsel %vm1042_vm12, %v1242_v8, %v1274_v39  ;;  %v941_v8 = vld [vmem:[#allocation10 + $0x18] sm:$0xff] }
 0x284   : > { %v1302_v61 = vmul.f32 %v1294_v52, %v957_v17  ;;  %v1244_v51 = vpop.permute.xlu1 %1243  ;;  %v1276_v4 = vpop.permute.xlu2 %1275  ;;  %v942_v17 = vld [vmem:[#allocation10 + $0x20] sm:$0xff] }
 0x285   : > { %v1295_v18 = vsel %vm1042_vm12, %v1244_v51, %v1276_v4  ;;  %v2927_v51 = vld [vmem:[#allocation11 + $0x20] sm:$0xff] }
 0x286   : > { %v2907_v47 = vadd.f32 %v1302_v61, %v1214_v0  ;;  %v2909_v26 = vmul.f32 %v1295_v18, %v958_v58 }
 0x288   : > { %1181 = vrot.lane.b32.xlu0 %v1164_v27, %s2263_s1 }
 0x28a   : > { %v1025_v1 = vpop.permute.xlu0 %1024  ;;  %1032 = vrot.lane.b32.xlu2 %v2881_v7, %s2265_s16  ;;  %1179 = vrot.lane.b32.xlu1 %v1163_v53, %s2263_s1 }
 0x28b   : > { %v1046_v29 = vsel %vm1042_vm12, %v993_v24, %v1025_v1 }
 0x28c   : > { %v1054_v31 = vmul.f32 %v1046_v29, %v941_v8  ;;  %v1356_v39 = vpop.permute.xlu1 %1355  ;;  %v1380_v18 = vpop.permute.xlu2 %1379 }
 0x28d   : > { %v1403_v29 = vsel %vm1042_vm12, %v1356_v39, %v1380_v18  ;;  %v1413_v39 = vmul.f32 %v2843_v25, %v2859_v30  ;;  %v955_v30 = vld [vmem:[#allocation13 + $0x8] sm:$0xff] }
 0x28e   : > { %v2921_v5 = vadd.f32 %v1054_v31, %v965_v59  ;;  %v1411_v59 = vmul.f32 %v1403_v29, %v954_v23  ;;  %v2939_v31 = vld [vmem:[#allocation11 + $0x38] sm:$0xff] }
 0x28f   : > { %3167 = vst [vmem:[#allocation24_spill] sm:$0xff] %v2939_v31 }
 0x292   : > { %v1138_v52 = vpop.permute.xlu0 %1137  ;;  %1145 = vrot.lane.b32.xlu2 %v2881_v7, %s2266_s18  ;;  %1433 = vrot.lane.b32.xlu1 %v1414_v43, %s2263_s1 }
 0x293   : > { %v1158_v61 = vsel %vm1042_vm12, %v1114_v16, %v1138_v52 }
 0x294   : > { %v995_v0 = vpop.permute.xlu1 %994  ;;  %v1236_v24 = vpop.permute.xlu2 %1235  ;;  %v1166_v21 = vmul.f32 %v1158_v61, %v941_v8 }
 0x29a   : > { %v1268_v4 = vpop.permute.xlu0 %1267  ;;  %1331 = vrot.lane.b32.xlu2 %v2927_v51, %s2263_s1  ;;  %1185 = vrot.lane.b32.xlu1 %v1166_v21, %s2263_s1 }
 0x29b   : > { %v1291_v36 = vsel %vm1042_vm12, %v1236_v24, %v1268_v4 }
 0x29c   : > { %v2933_v27 = vmul.f32 %v1291_v36, %v954_v23  ;;  %v1116_v53 = vpop.permute.xlu1 %1115  ;;  %v1027_v1 = vpop.permute.xlu2 %1026  ;;  %v959_v36 = vld [vmem:[#allocation13 + $0x28] sm:$0xff] }
 0x29d   : > { %v1047_v16 = vsel %vm1042_vm12, %v995_v0, %v1027_v1 }
 0x29e   : > { %v2937_v8 = vmul.f32 %v1047_v16, %v942_v17 }
 0x2a2   : > { %v1364_v41 = vpop.permute.xlu0 %1363  ;;  %1337 = vrot.lane.b32.xlu2 %v2939_v31, %s2263_s1  ;;  %1427 = vrot.lane.b32.xlu1 %v1411_v59, %s2263_s1 }
 0x2a3   : > { %v1407_v43 = vsel %vm1042_vm12, %v1364_v41, %v1388_v15  ;;  %v1157_v15 = vsel %vm1042_vm12, %v2887_v37, %v2845_v57 }
 0x2a4   : > { %v1415_v52 = vmul.f32 %v1407_v43, %v958_v58  ;;  %v1278_v24 = vpop.permute.xlu1 %1277  ;;  %v1140_v61 = vpop.permute.xlu2 %1139  ;;  %v1165_v58 = vmul.f32 %v1157_v15, %v2870_v19 }
 0x2a5   : > { %v1159_v18 = vsel %vm1042_vm12, %v1116_v53, %v1140_v61 }
 0x2a6   : > { %1435 = vrot.lane.b32.xlu0 %v1415_v52, %s2263_s1  ;;  %v1167_v21 = vmul.f32 %v1159_v18, %v942_v17  ;;  %v943_v52 = vld [vmem:[#allocation10 + $0x28] sm:$0xff] }
 0x2aa   : > { %v1390_v0 = vpop.permute.xlu0 %1389  ;;  %1431 = vrot.lane.b32.xlu2 %v1413_v39, %s2263_s1 }
 0x2ac   : > { %v1382_v4 = vpop.permute.xlu1 %1381  ;;  %v1270_v23 = vpop.permute.xlu2 %1269 }
 0x2ae   : > { %1187 = vrot.lane.b32.xlu0 %v1167_v21, %s2263_s1 }
 0x2b2   : > { %v1246_v1 = vpop.permute.xlu0 %1245  ;;  %1183 = vrot.lane.b32.xlu2 %v1165_v58, %s2263_s1 }
 0x2b3   : > { %v1296_v25 = vsel %vm1042_vm12, %v1246_v1, %v1278_v24 }
 0x2b4   : > { %v2957_v53 = vmul.f32 %v1296_v25, %v959_v36  ;;  %v1238_v17 = vpop.permute.xlu1 %1237  ;;  %v1366_v29 = vpop.permute.xlu2 %1365 }
 0x2b5   : > { %v1292_v16 = vsel %vm1042_vm12, %v1238_v17, %v1270_v23  ;;  %v960_v17 = vld [vmem:[#allocation13 + $0x30] sm:$0xff] }
 0x2b6   : > { %v2960_v59 = vmul.f32 %v1292_v16, %v955_v30 }
 0x2ba   : > { %v1358_v57 = vpop.permute.xlu0 %1357 }
 0x2bb   : > { %v1404_v37 = vsel %vm1042_vm12, %v1358_v57, %v1382_v4  ;;  %v1408_v4 = vsel %vm1042_vm12, %v1366_v29, %v1390_v0 }
 0x2bc   : > { %v1412_v41 = vmul.f32 %v1404_v37, %v955_v30  ;;  %v1029_v19 = vpop.permute.xlu1 %1028  ;;  %v1392_v43 = vpop.permute.xlu2 %1391  ;;  %v1416_v57 = vmul.f32 %v1408_v4, %v959_v36 }
 0x2be   : > { %1429 = vrot.lane.b32.xlu0 %v1412_v41, %s2263_s1 }
 0x2c2   : > { %v997_v61 = vpop.permute.xlu0 %996 }
 0x2c3   : > { %v1048_v24 = vsel %vm1042_vm12, %v997_v61, %v1029_v19  ;;  %v944_v61 = vld [vmem:[#allocation10 + $0x30] sm:$0xff] }
 0x2c4   : > { %v2965_v39 = vmul.f32 %v1048_v24, %v943_v52  ;;  %v1142_v18 = vpop.permute.xlu1 %1141  ;;  %v1248_v21 = vpop.permute.xlu2 %1247 }
 0x2ca   : > { %v1118_v15 = vpop.permute.xlu0 %1117 }
 0x2cb   : > { %v1160_v23 = vsel %vm1042_vm12, %v1118_v15, %v1142_v18  ;;  %v961_v18 = vld [vmem:[#allocation13 + $0x38] sm:$0xff] }
 0x2cc   : > { %v1168_v58 = vmul.f32 %v1160_v23, %v943_v52  ;;  %v1368_v1 = vpop.permute.xlu1 %1367  ;;  %v999_v25 = vpop.permute.xlu2 %998 }
 0x2ce   : > { %1189 = vrot.lane.b32.xlu2 %v1168_v58, %s2263_s1 }
 0x2d2   : > { %v1280_v30 = vpop.permute.xlu0 %1279 }
 0x2d3   : > { %v1297_v16 = vsel %vm1042_vm12, %v1248_v21, %v1280_v30 }
 0x2d4   : > { %v2971_v37 = vmul.f32 %v1297_v16, %v960_v17  ;;  %v1394_v41 = vpop.permute.xlu1 %1393  ;;  %v1120_v19 = vpop.permute.xlu2 %1119 }
 0x2d6   : > { %1437 = vrot.lane.b32.xlu2 %v1416_v57, %s2263_s1 }
 0x2da   : > { %v1031_v24 = vpop.permute.xlu0 %1030 }
 0x2db   : > { %v1049_v52 = vsel %vm1042_vm12, %v999_v25, %v1031_v24  ;;  %v1409_v25 = vsel %vm1042_vm12, %v1368_v1, %v1392_v43  ;;  %v945_v24 = vld [vmem:[#allocation10 + $0x38] sm:$0xff]  ;;  %v1100_v43 = vmul.f32 %v2568_v10, %v2706_v48  ;;  %v1350_v10 = vmul.f32 %v2802_v56, %v2734_v40 }
 0x2dc   : > { %v2975_v15 = vmul.f32 %v1049_v52, %v944_v61  ;;  %v1250_v23 = vpop.permute.xlu1 %1249  ;;  %v1282_v0 = vpop.permute.xlu2 %1281  ;;  %v1417_v52 = vmul.f32 %v1409_v25, %v960_v17  ;;  %v1101_v40 = vmul.f32 %v2570_v11, %v2711_v55  ;;  %v1211_v11 = vmul.f32 %v2658_v3, %v2717_v49 }
 0x2dd   : > { %v1298_v29 = vsel %vm1042_vm12, %v1250_v23, %v1282_v0 }
 0x2de   : > { %v2978_v58 = vmul.f32 %v1298_v29, %v961_v18 }
 0x2e2   : > { %v1144_v36 = vpop.permute.xlu0 %1143 }
 0x2e3   : > { %v1161_v21 = vsel %vm1042_vm12, %v1120_v19, %v1144_v36 }
 0x2e4   : > { %v1169_v4 = vmul.f32 %v1161_v21, %v944_v61  ;;  %v2981_v30 = vpop.permute.xlu1 %1333  ;;  %v1033_v16 = vpop.permute.xlu2 %1032 }
 0x2e6   : > { %1191 = vrot.lane.b32.xlu1 %v1169_v4, %s2263_s1  ;;  %v1099_v4 = vmul.f32 %v2566_v9, %v2696_v62  ;;  %v1349_v9 = vmul.f32 %v2675_v28, %v2691_v60 }
 0x2ea   : > { %v1370_v57 = vpop.permute.xlu0 %1369 }
 0x2eb   : > { %v1410_v17 = vsel %vm1042_vm12, %v1370_v57, %v1394_v41 }
 0x2ec   : > { %v1001_v31 = vpop.permute.xlu1 %1000  ;;  %v1146_v7 = vpop.permute.xlu2 %1145 }
 0x2ed   : > { %v1050_v23 = vsel %vm1042_vm12, %v1001_v31, %v1033_v16 }
 0x2ee   : > { %v2986_v0 = vmul.f32 %v1050_v23, %v945_v24  ;;  %1439 = vrot.lane.b32.xlu1 %v1417_v52, %s2263_s1 }
 0x2f2   : > { %v2989_v19 = vpop.permute.xlu0 %1335 }
 0x2f4   : > { %v1122_v61 = vpop.permute.xlu1 %1121  ;;  %v1332_v29 = vpop.permute.xlu2 %1331 }
 0x2f5   : > { %v1162_v36 = vsel %vm1042_vm12, %v1122_v61, %v1146_v7 }
 0x2f6   : > { %v1170_v21 = vmul.f32 %v1162_v36, %v945_v24  ;;  %v1418_v24 = vmul.f32 %v1410_v17, %v961_v18  ;;  %v1102_v18 = vmul.f32 %v2572_v13, %v2755_v35  ;;  %v1347_v13 = vmul.f32 %v2797_v46, %v2717_v49  ;;  %v1942_v46 = vld [vmem:[#allocation8 + $0x20] sm:$0xff] }
 0x2f7   : > { %v1307_v35 = vadd.f32 %v2933_v27, %v1211_v11  ;;  %v1103_v49 = vmul.f32 %v2574_v14, %v2763_v32  ;;  %v1943_v14 = vld [vmem:[#allocation8 + $0x28] sm:$0xff] }
 0x2f8   : > { %1193 = vrot.lane.b32.xlu0 %v1170_v21, %s2263_s1 }
 0x2fa   : > { %v1182_v1 = vpop.permute.xlu0 %1181 }
 0x2fb   : > { %v1204_v31 = vadd.f32 %v1182_v1, %v1100_v43 }
 0x2fc   : > { %v1180_v16 = vpop.permute.xlu1 %1179  ;;  %v2998_v25 = vpop.permute.xlu2 %1337 }
 0x2fd   : > { %v3002_v52 = vsel %vm488_vm0, %v2852_v44, %v1204_v31  ;;  %v1203_v7 = vadd.f32 %v1180_v16, %v1099_v4  ;;  %v1215_v31 = vmul.f32 %v2927_v51, %v2744_v33  ;;  %v966_v4 = vmul.f32 %v1942_v46, %v2763_v32 }
 0x2fe   : > { %v1104_v51 = vmul.f32 %v2576_v20, %v2800_v54  ;;  %v967_v32 = vmul.f32 %v1943_v14, %v2800_v54 }
 0x2ff   : > { %v1459_v23 = vsel %vm488_vm0, %v2824_v38, %v1203_v7  ;;  %v1311_v16 = vadd.f32 %v2909_v26, %v1215_v31  ;;  %v1063_v7 = vadd.f32 %v2937_v8, %v966_v4  ;;  %v1944_v26 = vld [vmem:[#allocation11 + $0x8] sm:$0xff] }
 0x300   : > { %1441 = vrot.lane.b32.xlu0 %v1418_v24, %s2263_s1  ;;  %v1212_v8 = vmul.f32 %v1944_v26, %v2726_v6  ;;  %v1064_v54 = vadd.f32 %v2965_v39, %v967_v32  ;;  %v1945_v39 = vld [vmem:[#allocation8 + $0x30] sm:$0xff] }
 0x304   : > { %v1434_v62 = vpop.permute.xlu1 %1433  ;;  %v1432_v48 = vpop.permute.xlu2 %1431 }
 0x305   : > { %v1454_v41 = vadd.f32 %v1434_v62, %v1350_v10  ;;  %v1453_v57 = vadd.f32 %v1432_v48, %v1349_v9  ;;  %v1216_v9 = vmul.f32 %v2872_v63, %v2778_v50  ;;  %v1352_v62 = vmul.f32 %v2981_v30, %v2778_v50 }
 0x306   : > { %v1308_v63 = vadd.f32 %v2960_v59, %v1212_v8 }
 0x307   : > { %v1470_v44 = vsel %vm488_vm0, %v2907_v47, %v1454_v41  ;;  %v1469_v38 = vsel %vm488_vm0, %v2865_v2, %v1453_v57  ;;  %v1348_v41 = vmul.f32 %v2677_v12, %v2726_v6  ;;  %v1312_v20 = vadd.f32 %v2957_v53, %v1216_v9  ;;  %v3168_v53 = vld [vmem:[#allocation23_spill] sm:$0xff] }
 0x308   : > { %v1105_v6 = vmul.f32 %v2578_v22, %v2850_v42  ;;  %v1217_v59 = vmul.f32 %v3168_v53, %v2818_v45 }
 0x30c   : > { %v1186_v56 = vpop.permute.xlu1 %1185  ;;  %v1184_v28 = vpop.permute.xlu2 %1183 }
 0x30d   : > { %v1206_v60 = vadd.f32 %v1186_v56, %v1102_v18  ;;  %v1205_v61 = vadd.f32 %v1184_v28, %v1101_v40 }
 0x30f   : > { %v1462_v36 = vsel %vm488_vm0, %v2921_v5, %v1206_v60  ;;  %v1461_v47 = vsel %vm488_vm0, %v2883_v34, %v1205_v61  ;;  %v1351_v34 = vmul.f32 %v1332_v29, %v2744_v33  ;;  %v968_v60 = vmul.f32 %v1945_v39, %v2850_v42  ;;  %v3169_v42 = vld [vmem:[#allocation22_spill] sm:$0xff] }
 0x310   : > { %v1481_v21 = vpack.c.bf16 %v1470_v44, %v1462_v36  ;;  %v1479_v43 = vpack.c.bf16 %v1469_v38, %v1461_v47  ;;  %v1353_v61 = vmul.f32 %v2989_v19, %v2818_v45  ;;  %v1313_v47 = vadd.f32 %v2971_v37, %v1217_v59  ;;  %v1946_v45 = vld [vmem:[#allocation8 + $0x38] sm:$0xff]  ;;  %v3172_v19 = vld [vmem:[#allocation24_spill] sm:$0xff] }
 0x311   : > { %v969_v37 = vmul.f32 %v1946_v45, %v3169_v42 }
 0x312   : > { %1497 = vst [vmem:[%s2701_s25 + $0x24] sm:$0xff] %v1481_v21  ;;  %v1065_v21 = vadd.f32 %v2975_v15, %v968_v60  ;;  %v3171_v15 = vld [vmem:[#allocation21_spill] sm:$0xff] }
 0x313   : > { %1495 = vst [vmem:[%s2701_s25 + $0x18] sm:$0xff] %v1479_v43  ;;  %v1066_v46 = vadd.f32 %v2986_v0, %v969_v37 }
 0x314   : > { %v1428_v55 = vpop.permute.xlu1 %1427 }
 0x315   : > { %v1451_v2 = vadd.f32 %v1428_v55, %v1347_v13 }
 0x317   : > { %v1467_v1 = vsel %vm488_vm0, %v1307_v35, %v1451_v2  ;;  %v3170_v35 = vld [vmem:[#allocation20_spill] sm:$0xff] }
 0x318   : > { %v1475_v5 = vpack.c.bf16 %v1467_v1, %v1459_v23  ;;  %v1436_v17 = vpop.permute.xlu0 %1435  ;;  %v1106_v2 = vmul.f32 %v3170_v35, %v3169_v42  ;;  %v1218_v1 = vmul.f32 %v3172_v19, %v3171_v15 }
 0x319   : > { %v1455_v3 = vadd.f32 %v1436_v17, %v1351_v34 }
 0x31a   : > { %1491 = vst [vmem:[%s2701_s25] sm:$0xff] %v1475_v5  ;;  %v1354_v5 = vmul.f32 %v2998_v25, %v3171_v15  ;;  %v1314_v31 = vadd.f32 %v2978_v58, %v1218_v1 }
 0x31b   : > { %v1471_v23 = vsel %vm488_vm0, %v1311_v16, %v1455_v3 }
 0x320   : > { %v1188_v27 = vpop.permute.xlu0 %1187 }
 0x321   : > { %v1207_v24 = vadd.f32 %v1188_v27, %v1103_v49 }
 0x323   : > { %v1463_v29 = vsel %vm488_vm0, %v1063_v7, %v1207_v24 }
 0x324   : > { %v1483_v10 = vpack.c.bf16 %v1471_v23, %v1463_v29 }
 0x326   : > { %1499 = vst [vmem:[%s2701_s25 + $0x30] sm:$0xff] %v1483_v10 }
 0x328   : > { %v1190_v33 = vpop.permute.xlu2 %1189 }
 0x329   : > { %v1208_v48 = vadd.f32 %v1190_v33, %v1104_v51 }
 0x32b   : > { %v1464_v40 = vsel %vm488_vm0, %v1064_v54, %v1208_v48 }
 0x330   : > { %v1430_v57 = vpop.permute.xlu0 %1429  ;;  %v1438_v44 = vpop.permute.xlu2 %1437 }
 0x331   : > { %v1452_v38 = vadd.f32 %v1430_v57, %v1348_v41  ;;  %v1456_v18 = vadd.f32 %v1438_v44, %v1352_v62 }
 0x333   : > { %v1468_v56 = vsel %vm488_vm0, %v1308_v63, %v1452_v38  ;;  %v1472_v50 = vsel %vm488_vm0, %v1312_v20, %v1456_v18 }
 0x334   : > { %v1477_v30 = vpack.c.bf16 %v1468_v56, %v3002_v52  ;;  %v1485_v28 = vpack.c.bf16 %v1472_v50, %v1464_v40 }
 0x336   : > { %1493 = vst [vmem:[%s2701_s25 + $0xc] sm:$0xff] %v1477_v30 }
 0x337   : > { %1501 = vst [vmem:[%s2701_s25 + $0x3c] sm:$0xff] %v1485_v28 }
 0x358   : > { %v1192_v12 = vpop.permute.xlu1 %1191 }
 0x359   : > { %v1209_v36 = vadd.f32 %v1192_v12, %v1105_v6 }
 0x35b   : > { %v1465_v13 = vsel %vm488_vm0, %v1065_v21, %v1209_v36 }
 0x360   : > { %v1440_v52 = vpop.permute.xlu1 %1439 }
 0x361   : > { %v1457_v43 = vadd.f32 %v1440_v52, %v1353_v61 }
 0x363   : > { %v1473_v22 = vsel %vm488_vm0, %v1313_v47, %v1457_v43 }
 0x364   : > { %v1487_v11 = vpack.c.bf16 %v1473_v22, %v1465_v13 }
 0x366   : > { %1503 = vst [vmem:[%s2701_s25 + $0x48] sm:$0xff] %v1487_v11 }
 0x36a   : > { %v1194_v55 = vpop.permute.xlu0 %1193 }
 0x36b   : > { %v1210_v17 = vadd.f32 %v1194_v55, %v1106_v2 }
 0x36d   : > { %v1466_v3 = vsel %vm488_vm0, %v1066_v46, %v1210_v17 }
 0x372   : > { %v1442_v34 = vpop.permute.xlu0 %1441 }
 0x373   : > { %v1458_v4 = vadd.f32 %v1442_v34, %v1354_v5 }
 0x375   : > { %v1474_v49 = vsel %vm488_vm0, %v1314_v31, %v1458_v4 }
 0x376   : > { %v1489_v27 = vpack.c.bf16 %v1474_v49, %v1466_v3 }
 0x378   : > { %1505 = vst [vmem:[%s2701_s25 + $0x54] sm:$0xff] %v1489_v27 }
 0x379   : > { %2184 = shalt.err (!%p2181_p13)
}
 0x37a   : > { %s2267_s5 = smov 192   ;;  %s2268_s25 = smov 12  }
 0x37b   : > { %1815 = dma.vmem_to_hbm [thread:$0]  (%p2428_p0), %s1524_s30, 1536, %s1526_s11, %s1508_s26, %s2267_s5, %s2267_s5, %s2268_s25  }
 0x37c PF: > { %s1540_s18 = sand.u32 1, %s2231_s27   ;;  %p1841_p2 = pnand %p1687_p4, %p2435_p6 }
 0x37d   : > { %s1541_s24 = scalar_lea.sflag [#allocation4], %s1540_s18 }
 0x37e   : > { %p1842_p5 = pneg %p1841_p2 }
 0x380   : > { %2226 = dma.done.wait (%p1842_p5), %s1541_s24, 1536  }
 0x381   : > { %2228 = vsyncadd (%p1842_p5), %s1541_s24, 4294965760  ;;  %s27_s10 = sadd.s32 1, %s2251_s10   ;;  %s3173_s27 = smov %s2235_s28 }
 0x382   : > { %p24_p7 = scmp.ge.s32.totalorder %s27_s10, 4   ;;  %s3174_s28 = smov %s2239_s29 }
 0x383   : > { %s3175_s29 = smov %s2433_s20  ;;  %s3176_s30 = smov %s2247_s9 }
 0x384   : > { %s3177_s9 = smov %s3179_s13  ;;  %26 = sbr.rel (!%p24_p7) target bundleno = 14 (0xe), region = 125 }
 0x389   :  { %1547 = vsyncpa [#allocation3], 1 }
 0x38a   :  { %1549 = vsyncpa [#allocation3 + $0x1], 1 }
 0x38b   :  { %1550 = vsyncpa [#allocation6], 1 }
 0x38c   :  { %1551 = vsyncpa [#allocation9], 1 }
 0x38d   :  { %1552 = vsyncpa [#allocation12], 1 }
 0x38e   :  { %1553 = vsyncpa [#allocation4], 1 }
 0x38f   :  { %1555 = vsyncpa [#allocation4 + $0x1], 1 }

</bundles_post_ra>
